<compile_context>
chip_gen: v7x
topology: tpu7x:2x2x1
jax: 0.10.0
libtpu: 0.0.40
codegen_flags: <defaults>
</compile_context>

<pallas_src>
import functools

import jax
import jax.numpy as jnp
from jax.experimental import pallas as pl
from jax.experimental.pallas import tpu as pltpu


def _round_up(x, m):
    return ((x + m - 1) // m) * m


# ----------------------------------------------------------------------------
# Kernel
# ----------------------------------------------------------------------------
def _decoder_kernel(n_layers, hid_p, emb_p, in_p, out_p,
                    x_ref, h0_ref, c0_ref, wemb_ref, wlstm_ref, wfc_ref,
                    bias_ref, pred_ref, hout_ref, cout_ref, xh_sc):
    """One decode step per grid iteration; weights + h/c stay resident in VMEM.

    Shapes (all padded, f32):
      x_ref    : (1, Bp, out_p)            tiled over the time grid axis
      h0/c0    : (n_layers, Bp, hid_p)     resident (constant index map)
      wemb_ref : (out_p, emb_p)
      wlstm_ref: (n_layers, in_p + hid_p, 4*hid_p)   fused [Wih ; Whh] per layer
      wfc_ref  : (hid_p, out_p)
      bias_ref : (n_layers + 2, BW)        row 0 = emb bias, rows 1..L = gate
                                           bias (bih+bhh), last row = fc bias
      pred_ref : (1, Bp, out_p)            tiled over time
      hout/cout: (n_layers, Bp, hid_p)     resident accumulator outputs
      xh_sc    : (Bp, in_p + hid_p)        packed [x | h_prev] matmul operand
    """
    t = pl.program_id(0)

    @pl.when(t == 0)
    def _init():
        hout_ref[...] = h0_ref[...]
        cout_ref[...] = c0_ref[...]
        xh_sc[...] = jnp.zeros_like(xh_sc)

    # --- embedding linear: (Bp, out_p) @ (out_p, emb_p) + bias
    x = x_ref[0]
    emb = (jnp.dot(x, wemb_ref[...], preferred_element_type=jnp.float32)
           + bias_ref[0:1, 0:emb_p])
    # dropout(p) in eval mode == identity

    layer_in = emb
    in_cols = emb_p
    for l in range(n_layers):
        h_prev = hout_ref[l]          # (Bp, hid_p)
        c_prev = cout_ref[l]

        # Pack [layer_in | h_prev] into the scratch operand.  Columns
        # [in_cols:in_p] may hold stale (finite) data from other layers/steps;
        # the corresponding weight-slab rows are zero, so they contribute 0.
        xh_sc[:, 0:in_cols] = layer_in
        xh_sc[:, in_p:in_p + hid_p] = h_prev

        # Single fused matmul per layer: K = in_p + hid_p.
        gates = (jnp.dot(xh_sc[...], wlstm_ref[l],
                         preferred_element_type=jnp.float32)
                 + bias_ref[1 + l:2 + l, 0:4 * hid_p])

        # PyTorch gate order: i, f, g, o (gate blocks padded to hid_p lanes,
        # so every slice below is 128-lane aligned).
        i_g = jax.nn.sigmoid(gates[:, 0 * hid_p:1 * hid_p])
        f_g = jax.nn.sigmoid(gates[:, 1 * hid_p:2 * hid_p])
        g_g = jnp.tanh(gates[:, 2 * hid_p:3 * hid_p])
        o_g = jax.nn.sigmoid(gates[:, 3 * hid_p:4 * hid_p])

        c_new = f_g * c_prev + i_g * g_g
        h_new = o_g * jnp.tanh(c_new)

        hout_ref[l] = h_new
        cout_ref[l] = c_new
        layer_in = h_new
        in_cols = hid_p
        # inter-layer dropout in eval mode == identity

    # --- fc_out: (Bp, hid_p) @ (hid_p, out_p) + bias  (lane-dense store)
    pred_ref[0] = (jnp.dot(layer_in, wfc_ref[...],
                           preferred_element_type=jnp.float32)
                   + bias_ref[n_layers + 1:n_layers + 2, 0:out_p])


# ----------------------------------------------------------------------------
# Parameter construction / packing (wrapper-side layout plumbing)
# ----------------------------------------------------------------------------
def make_params(key, output_dim, emb_dim, hid_dim, n_layers):
    """Deterministic synthetic parameters (PyTorch shapes, pre-transposed)."""
    def init(k, shape, scale=0.1):
        return scale * jax.random.normal(k, shape, dtype=jnp.float32)

    keys = jax.random.split(key, 4 + 4 * n_layers)
    ki = iter(keys)

    # nn.Linear(output_dim, emb_dim): stored transposed (out_dim, emb_dim)
    Wlin = init(next(ki), (output_dim, emb_dim))
    blin = init(next(ki), (1, emb_dim))

    lstm = []
    for l in range(n_layers):
        in_dim = emb_dim if l == 0 else hid_dim
        Wih = init(next(ki), (in_dim, 4 * hid_dim))     # transposed weight_ih
        Whh = init(next(ki), (hid_dim, 4 * hid_dim))    # transposed weight_hh
        bih = init(next(ki), (1, 4 * hid_dim))
        bhh = init(next(ki), (1, 4 * hid_dim))
        lstm.append((Wih, Whh, bih, bhh))

    # nn.Linear(hid_dim, output_dim): stored transposed (hid_dim, out_dim)
    Wfc = init(next(ki), (hid_dim, output_dim))
    bfc = init(next(ki), (1, output_dim))

    return {"Wlin": Wlin, "blin": blin, "lstm": lstm, "Wfc": Wfc, "bfc": bfc}


def pack_params(params, *, output_dim, emb_dim, hid_dim, n_layers):
    """Pad to (8,128)-aligned shapes and fuse per-layer weights/biases."""
    Op = _round_up(output_dim, 128)
    Ep = _round_up(emb_dim, 128)
    Hp = _round_up(hid_dim, 128)
    INp = max(Ep, Hp)
    BW = max(Ep, 4 * Hp, Op)

    def pad2(a, rows, cols):
        return jnp.pad(a, ((0, rows - a.shape[0]), (0, cols - a.shape[1])))

    def pad_gate_cols(a):
        # (rows, 4*hid) -> (rows, 4*Hp): pad each gate block independently so
        # gate g lives at columns [g*Hp : g*Hp + hid].
        rows = a.shape[0]
        a4 = a.reshape(rows, 4, hid_dim)
        a4 = jnp.pad(a4, ((0, 0), (0, 0), (0, Hp - hid_dim)))
        return a4.reshape(rows, 4 * Hp)

    W_emb = pad2(params["Wlin"], Op, Ep)

    w_layers = []
    b_rows = [jnp.pad(params["blin"], ((0, 0), (0, BW - emb_dim)))]
    for l in range(n_layers):
        Wih, Whh, bih, bhh = params["lstm"][l]
        in_l = Wih.shape[0]
        wih_g = pad_gate_cols(Wih)                       # (in_l, 4*Hp)
        whh_g = pad_gate_cols(Whh)                       # (hid, 4*Hp)
        slab = jnp.zeros((INp + Hp, 4 * Hp), jnp.float32)
        slab = slab.at[:in_l, :].set(wih_g)
        slab = slab.at[INp:INp + hid_dim, :].set(whh_g)
        w_layers.append(slab)
        b = pad_gate_cols(bih + bhh)                     # (1, 4*Hp)
        b_rows.append(jnp.pad(b, ((0, 0), (0, BW - 4 * Hp))))
    W_lstm = jnp.stack(w_layers)                          # (L, INp+Hp, 4*Hp)

    W_fc = pad2(params["Wfc"], Hp, Op)
    b_rows.append(jnp.pad(params["bfc"], ((0, 0), (0, BW - output_dim))))
    biases = jnp.concatenate(b_rows, axis=0)              # (L+2, BW)

    dims = dict(output_dim=output_dim, emb_dim=emb_dim, hid_dim=hid_dim,
                n_layers=n_layers, Op=Op, Ep=Ep, Hp=Hp, INp=INp, BW=BW)
    return {"W_emb": W_emb, "W_lstm": W_lstm, "W_fc": W_fc, "biases": biases,
            "dims": dims}


# ----------------------------------------------------------------------------
# Pallas call wrappers
# ----------------------------------------------------------------------------
def decoder_forward_seq(x_seq, hidden, cell, packed):
    """Run T teacher-forced decode steps in one kernel (weights DMA'd once).

    x_seq: (T, B, output_dim); hidden/cell: (n_layers, B, hid_dim).
    Returns (preds (T, B, output_dim), hidden', cell').
    """
    d = packed["dims"]
    output_dim, emb_dim, hid_dim = d["output_dim"], d["emb_dim"], d["hid_dim"]
    n_layers = d["n_layers"]
    Op, Ep, Hp, INp, BW = d["Op"], d["Ep"], d["Hp"], d["INp"], d["BW"]

    T, B, _ = x_seq.shape
    Bp = _round_up(max(B, 8), 8)

    x_p = jnp.pad(x_seq, ((0, 0), (0, Bp - B), (0, Op - output_dim)))
    h_p = jnp.pad(hidden, ((0, 0), (0, Bp - B), (0, Hp - hid_dim)))
    c_p = jnp.pad(cell, ((0, 0), (0, Bp - B), (0, Hp - hid_dim)))

    kernel = functools.partial(_decoder_kernel, n_layers, Hp, Ep, INp, Op)

    def fbytes(shape):
        n = 1
        for s in shape:
            n *= s
        return 4 * n

    total = (fbytes(x_p.shape) + fbytes(h_p.shape) + fbytes(c_p.shape)
             + fbytes(packed["W_emb"].shape) + fbytes(packed["W_lstm"].shape)
             + fbytes(packed["W_fc"].shape) + fbytes(packed["biases"].shape)
             + fbytes((T, Bp, Op)) + 2 * fbytes((n_layers, Bp, Hp))
             + fbytes((Bp, INp + Hp)))
    vmem_limit = max(16 << 20, min(100 << 20, 2 * total + (4 << 20)))

    grid_spec = pltpu.PrefetchScalarGridSpec(
        num_scalar_prefetch=0,
        grid=(T,),
        in_specs=[
            pl.BlockSpec((1, Bp, Op), lambda t: (t, 0, 0)),                # x
            pl.BlockSpec((n_layers, Bp, Hp), lambda t: (0, 0, 0)),         # h0
            pl.BlockSpec((n_layers, Bp, Hp), lambda t: (0, 0, 0)),         # c0
            pl.BlockSpec((Op, Ep), lambda t: (0, 0)),                      # W_emb
            pl.BlockSpec((n_layers, INp + Hp, 4 * Hp), lambda t: (0, 0, 0)),
            pl.BlockSpec((Hp, Op), lambda t: (0, 0)),                      # W_fc
            pl.BlockSpec((n_layers + 2, BW), lambda t: (0, 0)),            # biases
        ],
        out_specs=(
            pl.BlockSpec((1, Bp, Op), lambda t: (t, 0, 0)),                # pred
            pl.BlockSpec((n_layers, Bp, Hp), lambda t: (0, 0, 0)),         # h_out
            pl.BlockSpec((n_layers, Bp, Hp), lambda t: (0, 0, 0)),         # c_out
        ),
        scratch_shapes=[pltpu.VMEM((Bp, INp + Hp), jnp.float32)],
    )

    pred_p, h_out_p, c_out_p = pl.pallas_call(
        kernel,
        grid_spec=grid_spec,
        out_shape=(
            jax.ShapeDtypeStruct((T, Bp, Op), jnp.float32),
            jax.ShapeDtypeStruct((n_layers, Bp, Hp), jnp.float32),
            jax.ShapeDtypeStruct((n_layers, Bp, Hp), jnp.float32),
        ),
        input_output_aliases={1: 1, 2: 2},   # donate hidden/cell (update in place)
        compiler_params=pltpu.CompilerParams(
            dimension_semantics=("arbitrary",),   # recurrent carry over time
            vmem_limit_bytes=int(vmem_limit),
        ),
    )(x_p, h_p, c_p, packed["W_emb"], packed["W_lstm"], packed["W_fc"],
      packed["biases"])

    pred = pred_p[:, :B, :output_dim]
    h_new = h_out_p[:, :B, :hid_dim]
    c_new = c_out_p[:, :B, :hid_dim]
    return pred, h_new, c_new


def decoder_forward(x, hidden, cell, packed):
    """Single step — exact equivalent of Decoder.forward (eval mode)."""
    preds, h_new, c_new = decoder_forward_seq(x[None], hidden, cell, packed)
    return preds[0], h_new, c_new


# ----------------------------------------------------------------------------
# Pure-JAX reference mirroring the PyTorch forward (eval mode)
# ----------------------------------------------------------------------------
def decoder_reference(x, hidden, cell, params, *, n_layers, hid_dim):
    emb = x @ params["Wlin"] + params["blin"]
    layer_in = emb
    h_out, c_out = [], []
    for l in range(n_layers):
        Wih, Whh, bih, bhh = params["lstm"][l]
        g = layer_in @ Wih + bih + hidden[l] @ Whh + bhh
        i = jax.nn.sigmoid(g[:, 0 * hid_dim:1 * hid_dim])
        f = jax.nn.sigmoid(g[:, 1 * hid_dim:2 * hid_dim])
        gg = jnp.tanh(g[:, 2 * hid_dim:3 * hid_dim])
        o = jax.nn.sigmoid(g[:, 3 * hid_dim:4 * hid_dim])
        c_new = f * cell[l] + i * gg
        h_new = o * jnp.tanh(c_new)
        h_out.append(h_new)
        c_out.append(c_new)
        layer_in = h_new
    pred = layer_in @ params["Wfc"] + params["bfc"]
    return pred, jnp.stack(h_out), jnp.stack(c_out)


if __name__ == "__main__":
    B = 2
    output_dim = 10
    emb_dim = 16
    hid_dim = 32
    n_layers = 2
    T = 4   # decode steps for the weight-resident multi-step path

    key = jax.random.PRNGKey(0)
    k_p, k_x, k_h, k_c, k_seq = jax.random.split(key, 5)

    params = make_params(k_p, output_dim, emb_dim, hid_dim, n_layers)
    packed = pack_params(params, output_dim=output_dim, emb_dim=emb_dim,
                         hid_dim=hid_dim, n_layers=n_layers)

    x = jax.random.normal(k_x, (B, output_dim), dtype=jnp.float32)
    hidden = jax.random.normal(k_h, (n_layers, B, hid_dim), dtype=jnp.float32)
    cell = jax.random.normal(k_c, (n_layers, B, hid_dim), dtype=jnp.float32)

    # --- single step: exact module forward semantics
    pred, h_new, c_new = decoder_forward(x, hidden, cell, packed)
    jax.block_until_ready((pred, h_new, c_new))

    pred_r, h_r, c_r = decoder_reference(
        x, hidden, cell, params, n_layers=n_layers, hid_dim=hid_dim)
    assert jnp.allclose(pred, pred_r, atol=1e-5), "prediction mismatch"
    assert jnp.allclose(h_new, h_r, atol=1e-5), "hidden mismatch"
    assert jnp.allclose(c_new, c_r, atol=1e-5), "cell mismatch"

    # --- multi-step: T decode steps in one kernel, weights DMA'd once
    x_seq = jax.random.normal(k_seq, (T, B, output_dim), dtype=jnp.float32)
    preds, hT, cT = decoder_forward_seq(x_seq, hidden, cell, packed)
    jax.block_until_ready((preds, hT, cT))

    h_ref, c_ref = hidden, cell
    for t in range(T):
        p_r, h_ref, c_ref = decoder_reference(
            x_seq[t], h_ref, c_ref, params, n_layers=n_layers, hid_dim=hid_dim)
        assert jnp.allclose(preds[t], p_r, atol=1e-4), f"seq pred mismatch t={t}"
    assert jnp.allclose(hT, h_ref, atol=1e-4), "seq hidden mismatch"
    assert jnp.allclose(cT, c_ref, atol=1e-4), "seq cell mismatch"

    print("KERNEL_OK")
</pallas_src>

<mosaic_0001>
module attributes {stable_mosaic.version = 11 : i64} {
  func.func @_decoder_kernel(%arg0: i32, %arg1: memref<1x8x128xf32, #tpu.memory_space<vmem>>, %arg2: memref<2x8x128xf32, #tpu.memory_space<vmem>>, %arg3: memref<2x8x128xf32, #tpu.memory_space<vmem>>, %arg4: memref<128x128xf32, #tpu.memory_space<vmem>>, %arg5: memref<2x256x512xf32, #tpu.memory_space<vmem>>, %arg6: memref<128x128xf32, #tpu.memory_space<vmem>>, %arg7: memref<4x512xf32, #tpu.memory_space<vmem>>, %arg8: memref<1x8x128xf32, #tpu.memory_space<vmem>>, %arg9: memref<2x8x128xf32, #tpu.memory_space<vmem>>, %arg10: memref<2x8x128xf32, #tpu.memory_space<vmem>>, %arg11: memref<8x256xf32, #tpu.memory_space<vmem>>) attributes {dimension_semantics = [#tpu.dimension_semantics<arbitrary>], iteration_bounds = array<i64: 1>, scalar_prefetch = 0 : i64, scratch_operands = 1 : i64, tpu.core_type = #tpu.core_type<tc>, window_params = [{transform_indices = @transform_0, window_bounds = array<i64: 1, 8, 128>}, {pipeline_mode = #tpu.pipeline_mode<synchronous>, transform_indices = @transform_1, window_bounds = array<i64: 2, 8, 128>}, {pipeline_mode = #tpu.pipeline_mode<synchronous>, transform_indices = @transform_2, window_bounds = array<i64: 2, 8, 128>}, {pipeline_mode = #tpu.pipeline_mode<synchronous>, transform_indices = @transform_3, window_bounds = array<i64: 128, 128>}, {pipeline_mode = #tpu.pipeline_mode<synchronous>, transform_indices = @transform_4, window_bounds = array<i64: 2, 256, 512>}, {pipeline_mode = #tpu.pipeline_mode<synchronous>, transform_indices = @transform_5, window_bounds = array<i64: 128, 128>}, {pipeline_mode = #tpu.pipeline_mode<synchronous>, transform_indices = @transform_6, window_bounds = array<i64: 4, 512>}, {transform_indices = @transform_7, window_bounds = array<i64: 1, 8, 128>}, {pipeline_mode = #tpu.pipeline_mode<synchronous>, transform_indices = @transform_8, window_bounds = array<i64: 2, 8, 128>}, {pipeline_mode = #tpu.pipeline_mode<synchronous>, transform_indices = @transform_9, window_bounds = array<i64: 2, 8, 128>}]} {
    %c0_i32 = arith.constant 0 : i32
    %0 = arith.cmpi eq, %arg0, %c0_i32 : i32
    %1 = arith.extui %0 : i1 to i32
    %c0_i32_0 = arith.constant 0 : i32
    %2 = arith.cmpi ne, %1, %c0_i32_0 : i32
    scf.if %2 {
      %c0_65 = arith.constant 0 : index
      %c0_66 = arith.constant 0 : index
      %c0_67 = arith.constant 0 : index
      %106 = vector.load %arg2[%c0_65, %c0_66, %c0_67] : memref<2x8x128xf32, #tpu.memory_space<vmem>>, vector<2x8x128xf32>
      %c0_68 = arith.constant 0 : index
      %c0_69 = arith.constant 0 : index
      %c0_70 = arith.constant 0 : index
      %107 = vector.load %arg9[%c0_68, %c0_69, %c0_70] : memref<2x8x128xf32, #tpu.memory_space<vmem>>, vector<2x8x128xf32>
      tpu.vector_store %arg9[%c0_68, %c0_69, %c0_70], %106 {strides = array<i32>} : memref<2x8x128xf32, #tpu.memory_space<vmem>>, vector<2x8x128xf32>,
      %c0_71 = arith.constant 0 : index
      %c0_72 = arith.constant 0 : index
      %c0_73 = arith.constant 0 : index
      %108 = vector.load %arg3[%c0_71, %c0_72, %c0_73] : memref<2x8x128xf32, #tpu.memory_space<vmem>>, vector<2x8x128xf32>
      %c0_74 = arith.constant 0 : index
      %c0_75 = arith.constant 0 : index
      %c0_76 = arith.constant 0 : index
      %109 = vector.load %arg10[%c0_74, %c0_75, %c0_76] : memref<2x8x128xf32, #tpu.memory_space<vmem>>, vector<2x8x128xf32>
      tpu.vector_store %arg10[%c0_74, %c0_75, %c0_76], %108 {strides = array<i32>} : memref<2x8x128xf32, #tpu.memory_space<vmem>>, vector<2x8x128xf32>,
      %cst_77 = arith.constant 0.000000e+00 : f32
      %110 = vector.broadcast %cst_77 : f32 to vector<8x256xf32>
      %c0_78 = arith.constant 0 : index
      %c0_79 = arith.constant 0 : index
      %111 = vector.load %arg11[%c0_78, %c0_79] : memref<8x256xf32, #tpu.memory_space<vmem>>, vector<8x256xf32>
      tpu.vector_store %arg11[%c0_78, %c0_79], %110 {strides = array<i32>} : memref<8x256xf32, #tpu.memory_space<vmem>>, vector<8x256xf32>,
    } else {
    }
    %c0 = arith.constant 0 : index
    %c0_1 = arith.constant 0 : index
    %c0_2 = arith.constant 0 : index
    %3 = vector.load %arg1[%c0, %c0_1, %c0_2] : memref<1x8x128xf32, #tpu.memory_space<vmem>>, vector<1x8x128xf32>
    %4 = vector.shape_cast %3 : vector<1x8x128xf32> to vector<8x128xf32>
    %c0_3 = arith.constant 0 : index
    %c0_4 = arith.constant 0 : index
    %5 = vector.load %arg4[%c0_3, %c0_4] : memref<128x128xf32, #tpu.memory_space<vmem>>, vector<128x128xf32>
    %cst = arith.constant dense<0.000000e+00> : vector<8x128xf32>
    %6 = tpu.matmul %4, %5, %cst {dimension_numbers = #tpu.dot_dimension_numbers<[1], [0], [0], [1], [0, 0, 1, 1], [], []>} : vector<8x128xf32>, vector<128x128xf32>, vector<8x128xf32> -> vector<8x128xf32>
    %c0_5 = arith.constant 0 : index
    %c0_6 = arith.constant 0 : index
    %7 = vector.load %arg7[%c0_5, %c0_6] : memref<4x512xf32, #tpu.memory_space<vmem>>, vector<1x128xf32>
    %8 = vector.broadcast %7 : vector<1x128xf32> to vector<8x128xf32>
    %9 = arith.addf %6, %8 : vector<8x128xf32>
    %c0_7 = arith.constant 0 : index
    %c0_8 = arith.constant 0 : index
    %c0_9 = arith.constant 0 : index
    %10 = vector.load %arg9[%c0_7, %c0_8, %c0_9] : memref<2x8x128xf32, #tpu.memory_space<vmem>>, vector<1x8x128xf32>
    %11 = vector.shape_cast %10 : vector<1x8x128xf32> to vector<8x128xf32>
    %c0_10 = arith.constant 0 : index
    %c0_11 = arith.constant 0 : index
    %c0_12 = arith.constant 0 : index
    %12 = vector.load %arg10[%c0_10, %c0_11, %c0_12] : memref<2x8x128xf32, #tpu.memory_space<vmem>>, vector<1x8x128xf32>
    %13 = vector.shape_cast %12 : vector<1x8x128xf32> to vector<8x128xf32>
    %c0_13 = arith.constant 0 : index
    %c0_14 = arith.constant 0 : index
    %14 = vector.load %arg11[%c0_13, %c0_14] : memref<8x256xf32, #tpu.memory_space<vmem>>, vector<8x128xf32>
    tpu.vector_store %arg11[%c0_13, %c0_14], %9 {strides = array<i32>} : memref<8x256xf32, #tpu.memory_space<vmem>>, vector<8x128xf32>,
    %c0_15 = arith.constant 0 : index
    %c128 = arith.constant 128 : index
    %15 = vector.load %arg11[%c0_15, %c128] : memref<8x256xf32, #tpu.memory_space<vmem>>, vector<8x128xf32>
    tpu.vector_store %arg11[%c0_15, %c128], %11 {strides = array<i32>} : memref<8x256xf32, #tpu.memory_space<vmem>>, vector<8x128xf32>,
    %c0_16 = arith.constant 0 : index
    %c0_17 = arith.constant 0 : index
    %16 = vector.load %arg11[%c0_16, %c0_17] : memref<8x256xf32, #tpu.memory_space<vmem>>, vector<8x256xf32>
    %c0_18 = arith.constant 0 : index
    %c0_19 = arith.constant 0 : index
    %c0_20 = arith.constant 0 : index
    %17 = vector.load %arg5[%c0_18, %c0_19, %c0_20] : memref<2x256x512xf32, #tpu.memory_space<vmem>>, vector<1x256x512xf32>
    %18 = vector.shape_cast %17 : vector<1x256x512xf32> to vector<256x512xf32>
    %cst_21 = arith.constant dense<0.000000e+00> : vector<8x512xf32>
    %19 = tpu.matmul %16, %18, %cst_21 {dimension_numbers = #tpu.dot_dimension_numbers<[1], [0], [0], [1], [0, 0, 1, 1], [], []>} : vector<8x256xf32>, vector<256x512xf32>, vector<8x512xf32> -> vector<8x512xf32>
    %c1 = arith.constant 1 : index
    %c0_22 = arith.constant 0 : index
    %20 = vector.load %arg7[%c1, %c0_22] : memref<4x512xf32, #tpu.memory_space<vmem>>, vector<1x512xf32>
    %21 = vector.broadcast %20 : vector<1x512xf32> to vector<8x512xf32>
    %22 = arith.addf %19, %21 : vector<8x512xf32>
    %23 = vector.extract_strided_slice %22 {offsets = [0, 0], sizes = [8, 128], strides = [1, 1]} : vector<8x512xf32> to vector<8x128xf32>
    %24 = arith.negf %23 : vector<8x128xf32>
    %25 = math.exp %24 : vector<8x128xf32>
    %cst_23 = arith.constant 1.000000e+00 : f32
    %26 = vector.broadcast %cst_23 : f32 to vector<8x128xf32>
    %27 = arith.addf %26, %25 : vector<8x128xf32>
    %28 = arith.divf %26, %27 : vector<8x128xf32>
    %29 = vector.extract_strided_slice %22 {offsets = [0, 128], sizes = [8, 128], strides = [1, 1]} : vector<8x512xf32> to vector<8x128xf32>
    %30 = arith.negf %29 : vector<8x128xf32>
    %31 = math.exp %30 : vector<8x128xf32>
    %cst_24 = arith.constant 1.000000e+00 : f32
    %32 = vector.broadcast %cst_24 : f32 to vector<8x128xf32>
    %33 = arith.addf %32, %31 : vector<8x128xf32>
    %34 = arith.divf %32, %33 : vector<8x128xf32>
    %35 = vector.extract_strided_slice %22 {offsets = [0, 256], sizes = [8, 128], strides = [1, 1]} : vector<8x512xf32> to vector<8x128xf32>
    %36 = math.tanh %35 : vector<8x128xf32>
    %37 = vector.extract_strided_slice %22 {offsets = [0, 384], sizes = [8, 128], strides = [1, 1]} : vector<8x512xf32> to vector<8x128xf32>
    %38 = arith.negf %37 : vector<8x128xf32>
    %39 = math.exp %38 : vector<8x128xf32>
    %cst_25 = arith.constant 1.000000e+00 : f32
    %40 = vector.broadcast %cst_25 : f32 to vector<8x128xf32>
    %41 = arith.addf %40, %39 : vector<8x128xf32>
    %42 = arith.divf %40, %41 : vector<8x128xf32>
    %43 = arith.mulf %34, %13 : vector<8x128xf32>
    %44 = arith.mulf %28, %36 : vector<8x128xf32>
    %45 = arith.addf %43, %44 : vector<8x128xf32>
    %46 = math.tanh %45 : vector<8x128xf32>
    %47 = arith.mulf %42, %46 : vector<8x128xf32>
    %c0_26 = arith.constant 0 : index
    %c0_27 = arith.constant 0 : index
    %c0_28 = arith.constant 0 : index
    %48 = vector.load %arg9[%c0_26, %c0_27, %c0_28] : memref<2x8x128xf32, #tpu.memory_space<vmem>>, vector<1x8x128xf32>
    %49 = vector.shape_cast %48 : vector<1x8x128xf32> to vector<8x128xf32>
    %50 = vector.shape_cast %47 : vector<8x128xf32> to vector<1x8x128xf32>
    tpu.vector_store %arg9[%c0_26, %c0_27, %c0_28], %50 {strides = array<i32>} : memref<2x8x128xf32, #tpu.memory_space<vmem>>, vector<1x8x128xf32>,
    %c0_29 = arith.constant 0 : index
    %c0_30 = arith.constant 0 : index
    %c0_31 = arith.constant 0 : index
    %51 = vector.load %arg10[%c0_29, %c0_30, %c0_31] : memref<2x8x128xf32, #tpu.memory_space<vmem>>, vector<1x8x128xf32>
    %52 = vector.shape_cast %51 : vector<1x8x128xf32> to vector<8x128xf32>
    %53 = vector.shape_cast %45 : vector<8x128xf32> to vector<1x8x128xf32>
    tpu.vector_store %arg10[%c0_29, %c0_30, %c0_31], %53 {strides = array<i32>} : memref<2x8x128xf32, #tpu.memory_space<vmem>>, vector<1x8x128xf32>,
    %c1_32 = arith.constant 1 : index
    %c0_33 = arith.constant 0 : index
    %c0_34 = arith.constant 0 : index
    %54 = vector.load %arg9[%c1_32, %c0_33, %c0_34] : memref<2x8x128xf32, #tpu.memory_space<vmem>>, vector<1x8x128xf32>
    %55 = vector.shape_cast %54 : vector<1x8x128xf32> to vector<8x128xf32>
    %c1_35 = arith.constant 1 : index
    %c0_36 = arith.constant 0 : index
    %c0_37 = arith.constant 0 : index
    %56 = vector.load %arg10[%c1_35, %c0_36, %c0_37] : memref<2x8x128xf32, #tpu.memory_space<vmem>>, vector<1x8x128xf32>
    %57 = vector.shape_cast %56 : vector<1x8x128xf32> to vector<8x128xf32>
    %c0_38 = arith.constant 0 : index
    %c0_39 = arith.constant 0 : index
    %58 = vector.load %arg11[%c0_38, %c0_39] : memref<8x256xf32, #tpu.memory_space<vmem>>, vector<8x128xf32>
    tpu.vector_store %arg11[%c0_38, %c0_39], %47 {strides = array<i32>} : memref<8x256xf32, #tpu.memory_space<vmem>>, vector<8x128xf32>,
    %c0_40 = arith.constant 0 : index
    %c128_41 = arith.constant 128 : index
    %59 = vector.load %arg11[%c0_40, %c128_41] : memref<8x256xf32, #tpu.memory_space<vmem>>, vector<8x128xf32>
    tpu.vector_store %arg11[%c0_40, %c128_41], %55 {strides = array<i32>} : memref<8x256xf32, #tpu.memory_space<vmem>>, vector<8x128xf32>,
    %c0_42 = arith.constant 0 : index
    %c0_43 = arith.constant 0 : index
    %60 = vector.load %arg11[%c0_42, %c0_43] : memref<8x256xf32, #tpu.memory_space<vmem>>, vector<8x256xf32>
    %c1_44 = arith.constant 1 : index
    %c0_45 = arith.constant 0 : index
    %c0_46 = arith.constant 0 : index
    %61 = vector.load %arg5[%c1_44, %c0_45, %c0_46] : memref<2x256x512xf32, #tpu.memory_space<vmem>>, vector<1x256x512xf32>
    %62 = vector.shape_cast %61 : vector<1x256x512xf32> to vector<256x512xf32>
    %cst_47 = arith.constant dense<0.000000e+00> : vector<8x512xf32>
    %63 = tpu.matmul %60, %62, %cst_47 {dimension_numbers = #tpu.dot_dimension_numbers<[1], [0], [0], [1], [0, 0, 1, 1], [], []>} : vector<8x256xf32>, vector<256x512xf32>, vector<8x512xf32> -> vector<8x512xf32>
    %c2 = arith.constant 2 : index
    %c0_48 = arith.constant 0 : index
    %64 = vector.load %arg7[%c2, %c0_48] : memref<4x512xf32, #tpu.memory_space<vmem>>, vector<1x512xf32>
    %65 = vector.broadcast %64 : vector<1x512xf32> to vector<8x512xf32>
    %66 = arith.addf %63, %65 : vector<8x512xf32>
    %67 = vector.extract_strided_slice %66 {offsets = [0, 0], sizes = [8, 128], strides = [1, 1]} : vector<8x512xf32> to vector<8x128xf32>
    %68 = arith.negf %67 : vector<8x128xf32>
    %69 = math.exp %68 : vector<8x128xf32>
    %cst_49 = arith.constant 1.000000e+00 : f32
    %70 = vector.broadcast %cst_49 : f32 to vector<8x128xf32>
    %71 = arith.addf %70, %69 : vector<8x128xf32>
    %72 = arith.divf %70, %71 : vector<8x128xf32>
    %73 = vector.extract_strided_slice %66 {offsets = [0, 128], sizes = [8, 128], strides = [1, 1]} : vector<8x512xf32> to vector<8x128xf32>
    %74 = arith.negf %73 : vector<8x128xf32>
    %75 = math.exp %74 : vector<8x128xf32>
    %cst_50 = arith.constant 1.000000e+00 : f32
    %76 = vector.broadcast %cst_50 : f32 to vector<8x128xf32>
    %77 = arith.addf %76, %75 : vector<8x128xf32>
    %78 = arith.divf %76, %77 : vector<8x128xf32>
    %79 = vector.extract_strided_slice %66 {offsets = [0, 256], sizes = [8, 128], strides = [1, 1]} : vector<8x512xf32> to vector<8x128xf32>
    %80 = math.tanh %79 : vector<8x128xf32>
    %81 = vector.extract_strided_slice %66 {offsets = [0, 384], sizes = [8, 128], strides = [1, 1]} : vector<8x512xf32> to vector<8x128xf32>
    %82 = arith.negf %81 : vector<8x128xf32>
    %83 = math.exp %82 : vector<8x128xf32>
    %cst_51 = arith.constant 1.000000e+00 : f32
    %84 = vector.broadcast %cst_51 : f32 to vector<8x128xf32>
    %85 = arith.addf %84, %83 : vector<8x128xf32>
    %86 = arith.divf %84, %85 : vector<8x128xf32>
    %87 = arith.mulf %78, %57 : vector<8x128xf32>
    %88 = arith.mulf %72, %80 : vector<8x128xf32>
    %89 = arith.addf %87, %88 : vector<8x128xf32>
    %90 = math.tanh %89 : vector<8x128xf32>
    %91 = arith.mulf %86, %90 : vector<8x128xf32>
    %c1_52 = arith.constant 1 : index
    %c0_53 = arith.constant 0 : index
    %c0_54 = arith.constant 0 : index
    %92 = vector.load %arg9[%c1_52, %c0_53, %c0_54] : memref<2x8x128xf32, #tpu.memory_space<vmem>>, vector<1x8x128xf32>
    %93 = vector.shape_cast %92 : vector<1x8x128xf32> to vector<8x128xf32>
    %94 = vector.shape_cast %91 : vector<8x128xf32> to vector<1x8x128xf32>
    tpu.vector_store %arg9[%c1_52, %c0_53, %c0_54], %94 {strides = array<i32>} : memref<2x8x128xf32, #tpu.memory_space<vmem>>, vector<1x8x128xf32>,
    %c1_55 = arith.constant 1 : index
    %c0_56 = arith.constant 0 : index
    %c0_57 = arith.constant 0 : index
    %95 = vector.load %arg10[%c1_55, %c0_56, %c0_57] : memref<2x8x128xf32, #tpu.memory_space<vmem>>, vector<1x8x128xf32>
    %96 = vector.shape_cast %95 : vector<1x8x128xf32> to vector<8x128xf32>
    %97 = vector.shape_cast %89 : vector<8x128xf32> to vector<1x8x128xf32>
    tpu.vector_store %arg10[%c1_55, %c0_56, %c0_57], %97 {strides = array<i32>} : memref<2x8x128xf32, #tpu.memory_space<vmem>>, vector<1x8x128xf32>,
    %c0_58 = arith.constant 0 : index
    %c0_59 = arith.constant 0 : index
    %98 = vector.load %arg6[%c0_58, %c0_59] : memref<128x128xf32, #tpu.memory_space<vmem>>, vector<128x128xf32>
    %cst_60 = arith.constant dense<0.000000e+00> : vector<8x128xf32>
    %99 = tpu.matmul %91, %98, %cst_60 {dimension_numbers = #tpu.dot_dimension_numbers<[1], [0], [0], [1], [0, 0, 1, 1], [], []>} : vector<8x128xf32>, vector<128x128xf32>, vector<8x128xf32> -> vector<8x128xf32>
    %c3 = arith.constant 3 : index
    %c0_61 = arith.constant 0 : index
    %100 = vector.load %arg7[%c3, %c0_61] : memref<4x512xf32, #tpu.memory_space<vmem>>, vector<1x128xf32>
    %101 = vector.broadcast %100 : vector<1x128xf32> to vector<8x128xf32>
    %102 = arith.addf %99, %101 : vector<8x128xf32>
    %c0_62 = arith.constant 0 : index
    %c0_63 = arith.constant 0 : index
    %c0_64 = arith.constant 0 : index
    %103 = vector.load %arg8[%c0_62, %c0_63, %c0_64] : memref<1x8x128xf32, #tpu.memory_space<vmem>>, vector<1x8x128xf32>
    %104 = vector.shape_cast %103 : vector<1x8x128xf32> to vector<8x128xf32>
    %105 = vector.shape_cast %102 : vector<8x128xf32> to vector<1x8x128xf32>
    tpu.vector_store %arg8[%c0_62, %c0_63, %c0_64], %105 {strides = array<i32>} : memref<1x8x128xf32, #tpu.memory_space<vmem>>, vector<1x8x128xf32>,
    return
  }
  func.func @transform_0(%arg0: i32) -> (i32, i32, i32) {
    %c0_i32 = arith.constant 0 : i32
    %c0_i32_0 = arith.constant 0 : i32
    %c0_i32_1 = arith.constant 0 : i32
    return %arg0, %c0_i32, %c0_i32_0 : i32, i32, i32
  }
  func.func @transform_1(%arg0: i32) -> (i32, i32, i32) {
    %c0_i32 = arith.constant 0 : i32
    %c0_i32_0 = arith.constant 0 : i32
    %c0_i32_1 = arith.constant 0 : i32
    %c0_i32_2 = arith.constant 0 : i32
    return %c0_i32, %c0_i32_0, %c0_i32_1 : i32, i32, i32
  }
  func.func @transform_2(%arg0: i32) -> (i32, i32, i32) {
    %c0_i32 = arith.constant 0 : i32
    %c0_i32_0 = arith.constant 0 : i32
    %c0_i32_1 = arith.constant 0 : i32
    %c0_i32_2 = arith.constant 0 : i32
    return %c0_i32, %c0_i32_0, %c0_i32_1 : i32, i32, i32
  }
  func.func @transform_3(%arg0: i32) -> (i32, i32) {
    %c0_i32 = arith.constant 0 : i32
    %c0_i32_0 = arith.constant 0 : i32
    %c0_i32_1 = arith.constant 0 : i32
    return %c0_i32, %c0_i32_0 : i32, i32
  }
  func.func @transform_4(%arg0: i32) -> (i32, i32, i32) {
    %c0_i32 = arith.constant 0 : i32
    %c0_i32_0 = arith.constant 0 : i32
    %c0_i32_1 = arith.constant 0 : i32
    %c0_i32_2 = arith.constant 0 : i32
    return %c0_i32, %c0_i32_0, %c0_i32_1 : i32, i32, i32
  }
  func.func @transform_5(%arg0: i32) -> (i32, i32) {
    %c0_i32 = arith.constant 0 : i32
    %c0_i32_0 = arith.constant 0 : i32
    %c0_i32_1 = arith.constant 0 : i32
    return %c0_i32, %c0_i32_0 : i32, i32
  }
  func.func @transform_6(%arg0: i32) -> (i32, i32) {
    %c0_i32 = arith.constant 0 : i32
    %c0_i32_0 = arith.constant 0 : i32
    %c0_i32_1 = arith.constant 0 : i32
    return %c0_i32, %c0_i32_0 : i32, i32
  }
  func.func @transform_7(%arg0: i32) -> (i32, i32, i32) {
    %c0_i32 = arith.constant 0 : i32
    %c0_i32_0 = arith.constant 0 : i32
    %c0_i32_1 = arith.constant 0 : i32
    return %arg0, %c0_i32, %c0_i32_0 : i32, i32, i32
  }
  func.func @transform_8(%arg0: i32) -> (i32, i32, i32) {
    %c0_i32 = arith.constant 0 : i32
    %c0_i32_0 = arith.constant 0 : i32
    %c0_i32_1 = arith.constant 0 : i32
    %c0_i32_2 = arith.constant 0 : i32
    return %c0_i32, %c0_i32_0, %c0_i32_1 : i32, i32, i32
  }
  func.func @transform_9(%arg0: i32) -> (i32, i32, i32) {
    %c0_i32 = arith.constant 0 : i32
    %c0_i32_0 = arith.constant 0 : i32
    %c0_i32_1 = arith.constant 0 : i32
    %c0_i32_2 = arith.constant 0 : i32
    return %c0_i32, %c0_i32_0, %c0_i32_1 : i32, i32, i32
  }
}

</mosaic_0001>

<bundles_post_ra>
// kernel: tpu_custom_call.1
= control target key start
LH: loop header
LB: loop body
LE: loop exit
PB: predicated region body
PF: predicated region fallthrough
CT: control target
= control target key end

     0   :  { %15 = vsyncpa [#allocation4], 0  ;;  %s1899_s0 = inlined_call_operand.vmem [shape: f32[1,8,128], index: 0, kind: input, shape index: {}]   ;;  %s1900_s1 = inlined_call_operand.hbm [shape: f32[2,8,128], index: 1, kind: input, shape index: {}, may-alias: {1,8}]   ;;  %s1901_s2 = inlined_call_operand.hbm [shape: f32[2,8,128], index: 2, kind: input, shape index: {}, may-alias: {2,9}]   ;;  %s1902_s3 = inlined_call_operand.hbm [shape: f32[128,128], index: 3, kind: input, shape index: {}]   ;;  %s1903_s4 = inlined_call_operand.hbm [shape: f32[2,256,512], index: 4, kind: input, shape index: {}]   ;;  %s1904_s5 = inlined_call_operand.hbm [shape: f32[128,128], index: 5, kind: input, shape index: {}]   ;;  %s1905_s6 = inlined_call_operand.vmem [shape: f32[4,512], index: 6, kind: input, shape index: {}]   ;;  %s1906_s7 = inlined_call_operand.hbm [shape: f32[1,8,128], index: 7, kind: output, shape index: {0}]   ;;  %s1907_s8 = inlined_call_operand.hbm [shape: f32[2,8,128], index: 8, kind: output, shape index: {1}, may-alias: {1,8}]   ;;  %s1908_s9 = inlined_call_operand.hbm [shape: f32[2,8,128], index: 9, kind: output, shape index: {2}, may-alias: {2,9}]  }
   0x1   :  { %16 = vsyncpa [#allocation7], 0 }
   0x2   :  { %17 = vsyncpa [#allocation10], 0 }
   0x3   :  { %18 = vsyncpa [#allocation5], 0 }
   0x4   :  { %19 = vsyncpa [#allocation14], 0  ;;  %s1649_s30 = smov [#allocation6]   ;;  %s1650_s11 = smov [#allocation9]  }
   0x5   :  { %s39_s10 = sshll.u32 %s1649_s30, 4  ;;  %s63_s12 = sshll.u32 %s1650_s11, 4  ;;  %s40_s10 = int_to_ptr.vmem [resolvable:$true] %s39_s10  ;;  %s1714_s12 = int_to_ptr.vmem [resolvable:$true] %s63_s12 }
   0x6   :  { %s1463_s15 = scalar_lea.hbm %s1901_s2, 256 }
   0x7   :  { %p1464_p0 = scmp.ne.s32.totalorder %s1901_s2, %s1463_s15  ;;  %p1467_p1 = scmp.lt.u32.totalorder %s1463_s15, %s1901_s2 }
   0x9   :  { %p1469_p2 = pnand %p1467_p1, %p1464_p0 }
   0xb   :  { %1472 = shalt.err (!%p1469_p2)
}
   0xc   :  { %s1473_s20 = scalar_lea.vmem %s40_s10, 256  ;;  %p1478_p4 = scmp.lt.s32.totalorder %s40_s10, %s40_s10 }
   0xd   :  { %p1474_p3 = scmp.ne.s32.totalorder %s40_s10, %s1473_s20  ;;  %p1479_p5 = scmp.lt.s32.totalorder %s1473_s20, %s1473_s20 }
   0xf   :  { %p1480_p6 = por %p1479_p5, %p1478_p4 }
  0x11   :  { %p1481_p7 = pnand %p1480_p6, %p1474_p3 }
  0x13   :  { %1484 = shalt.err (!%p1481_p7)
}
  0x14   :  { %s1651_s21 = smov 128   ;;  %s1652_s22 = smov 8  }
  0x15   :  { %45 = dma.hbm_to_vmem [thread:$0]  %s1901_s2, 256, %s40_s10, [#allocation7], %s1651_s21, %s1651_s21, %s1652_s22  }
  0x16   :  { %s1485_s27 = scalar_lea.hbm %s1903_s4, 32768 }
  0x17   :  { %p1486_p8 = scmp.ne.s32.totalorder %s1903_s4, %s1485_s27  ;;  %p1489_p9 = scmp.lt.u32.totalorder %s1485_s27, %s1903_s4 }
  0x19   :  { %p1491_p10 = pnand %p1489_p9, %p1486_p8 }
  0x1b   :  { %1494 = shalt.err (!%p1491_p10)
}
  0x1c   :  { %s1495_s13 = scalar_lea.vmem %s1714_s12, 32768  ;;  %p1500_p12 = scmp.lt.s32.totalorder %s1714_s12, %s1714_s12 }
  0x1d   :  { %p1496_p11 = scmp.ne.s32.totalorder %s1714_s12, %s1495_s13  ;;  %p1501_p13 = scmp.lt.s32.totalorder %s1495_s13, %s1495_s13 }
  0x1f   :  { %p1502_p0 = por %p1501_p13, %p1500_p12 }
  0x21   :  { %p1503_p1 = pnand %p1502_p0, %p1496_p11 }
  0x23   :  { %1506 = shalt.err (!%p1503_p1)
}
  0x24   :  { %s1653_s2 = smov 512   ;;  %s1654_s10 = smov 32  }
  0x25   :  { %69 = dma.hbm_to_vmem [thread:$0]  %s1903_s4, 32768, %s1714_s12, [#allocation10], %s1653_s2, %s1653_s2, %s1654_s10  }
  0x26   :  { %s1655_s16 = smov [#allocation3]   ;;  %s1656_s18 = smov [#allocation8]  }
  0x27   :  { %s27_s17 = sshll.u32 %s1655_s16, 4  ;;  %s51_s19 = sshll.u32 %s1656_s18, 4  ;;  %s28_s17 = int_to_ptr.vmem [resolvable:$true] %s27_s17  ;;  %s1748_s19 = int_to_ptr.vmem [resolvable:$true] %s51_s19 }
  0x28   :  { %s1507_s24 = scalar_lea.hbm %s1900_s1, 256 }
  0x29   :  { %p1508_p2 = scmp.ne.s32.totalorder %s1900_s1, %s1507_s24  ;;  %p1511_p3 = scmp.lt.u32.totalorder %s1507_s24, %s1900_s1 }
  0x2b   :  { %p1513_p4 = pnand %p1511_p3, %p1508_p2 }
  0x2d   :  { %1516 = shalt.err (!%p1513_p4)
}
  0x2e   :  { %s1517_s4 = scalar_lea.vmem %s28_s17, 256  ;;  %p1522_p6 = scmp.lt.s32.totalorder %s28_s17, %s28_s17 }
  0x2f   :  { %p1518_p5 = scmp.ne.s32.totalorder %s28_s17, %s1517_s4  ;;  %p1523_p7 = scmp.lt.s32.totalorder %s1517_s4, %s1517_s4 }
  0x31   :  { %p1524_p8 = por %p1523_p7, %p1522_p6 }
  0x33   :  { %p1525_p9 = pnand %p1524_p8, %p1518_p5 }
  0x35   :  { %1528 = shalt.err (!%p1525_p9)
}
  0x36   :  { %33 = dma.hbm_to_vmem [thread:$0]  %s1900_s1, 256, %s28_s17, [#allocation4], %s1651_s21, %s1651_s21, %s1652_s22  }
  0x37   :  { %s1529_s13 = scalar_lea.hbm %s1902_s3, 2048 }
  0x38   :  { %p1530_p10 = scmp.ne.s32.totalorder %s1902_s3, %s1529_s13  ;;  %p1533_p11 = scmp.lt.u32.totalorder %s1529_s13, %s1902_s3 }
  0x3a   :  { %p1535_p12 = pnand %p1533_p11, %p1530_p10 }
  0x3c   :  { %1538 = shalt.err (!%p1535_p12)
}
  0x3d   :  { %s1539_s16 = scalar_lea.vmem %s1748_s19, 2048  ;;  %p1544_p0 = scmp.lt.s32.totalorder %s1748_s19, %s1748_s19 }
  0x3e   :  { %p1540_p13 = scmp.ne.s32.totalorder %s1748_s19, %s1539_s16  ;;  %p1545_p1 = scmp.lt.s32.totalorder %s1539_s16, %s1539_s16 }
  0x40   :  { %p1546_p2 = por %p1545_p1, %p1544_p0 }
  0x42   :  { %p1547_p3 = pnand %p1546_p2, %p1540_p13 }
  0x44   :  { %1550 = shalt.err (!%p1547_p3)
}
  0x45   :  { %57 = dma.hbm_to_vmem [thread:$0]  %s1902_s3, 2048, %s1748_s19, [#allocation7], %s1651_s21, %s1651_s21, %s1652_s22  }
  0x46   :  { %s1657_s18 = smov [#allocation11]   ;;  %s1551_s25 = scalar_lea.hbm %s1904_s5, 2048 }
  0x47   :  { %s75_s20 = sshll.u32 %s1657_s18, 4  ;;  %p1552_p4 = scmp.ne.s32.totalorder %s1904_s5, %s1551_s25  ;;  %s76_s20 = int_to_ptr.vmem [resolvable:$true] %s75_s20 }
  0x48   :  { %p1555_p5 = scmp.lt.u32.totalorder %s1551_s25, %s1904_s5 }
  0x4a   :  { %p1557_p6 = pnand %p1555_p5, %p1552_p4 }
  0x4c   :  { %1560 = shalt.err (!%p1557_p6)
}
  0x4d   :  { %s1561_s12 = scalar_lea.vmem %s76_s20, 2048  ;;  %p1566_p8 = scmp.lt.s32.totalorder %s76_s20, %s76_s20 }
  0x4e   :  { %p1562_p7 = scmp.ne.s32.totalorder %s76_s20, %s1561_s12  ;;  %p1567_p9 = scmp.lt.s32.totalorder %s1561_s12, %s1561_s12 }
  0x50   :  { %p1568_p10 = por %p1567_p9, %p1566_p8 }
  0x52   :  { %p1569_p11 = pnand %p1568_p10, %p1562_p7 }
  0x54   :  { %1572 = shalt.err (!%p1569_p11)
}
  0x55   :  { %81 = dma.hbm_to_vmem [thread:$0]  %s1904_s5, 2048, %s76_s20, [#allocation10], %s1651_s21, %s1651_s21, %s1652_s22  }
  0x56   :  { %1639 = dma.done.wait [#allocation4], 256  }
  0x57   :  { %1640 = vsyncadd [#allocation4], 4294967040 }
  0x58   :  { %1641 = dma.done.wait [#allocation7], 2304  }
  0x59   :  { %1642 = vsyncadd [#allocation7], 4294964992 }
  0x5a   :  { %1643 = dma.done.wait [#allocation10], 34816  }
  0x5b   :  { %1644 = vsyncadd [#allocation10], 4294932480  ;;  %v1658_v0 = vmov 0.0|0.0   ;;  %vm1659_vm0 = vmmov 0   ;;  %v1660_v1 = vmov 0.0   ;;  %v114_v2 = vld [vmem:[#allocation8] sm:$0xff] }
  0x5c   :  { %1112 = vmatprep.subr.bf16.mxu0 %v1658_v0  ;;  %1074 = vmatprep.mubr.msk.f32.mxu0 %vm1659_vm0, %v1660_v1  ;;  %v115_v3 = vld [vmem:[#allocation8 + $0x8] sm:$0xff]  ;;  %v116_v4 = vld [vmem:[#allocation8 + $0x10] sm:$0xff]  ;;  %v117_v6 = vld [vmem:[#allocation8 + $0x18] sm:$0xff]  ;;  %s1661_s14 = smov [#allocation13]  }
  0x5d   :  { %v1113_v5 = vpack.c.bf16 %v115_v3, %v114_v2  ;;  %v1116_v7 = vpack.c.bf16 %v117_v6, %v116_v4  ;;  %v118_v8 = vld [vmem:[#allocation8 + $0x20] sm:$0xff]  ;;  %v119_v9 = vld [vmem:[#allocation8 + $0x28] sm:$0xff]  ;;  %v120_v13 = vld [vmem:[#allocation8 + $0x30] sm:$0xff]  ;;  %s965_s15 = sshll.u32 %s1661_s14, 4  ;;  %s966_s15 = int_to_ptr.vmem [resolvable:$true] %s965_s15 }
  0x5e   :  { %v212_v10 = vld [vmem:[#allocation9 + $0x8] sm:$0xff]  ;;  %v1119_v12 = vpack.c.bf16 %v119_v9, %v118_v8  ;;  %v211_v15 = vld [vmem:[#allocation9] sm:$0xff]  ;;  %v121_v17 = vld [vmem:[#allocation8 + $0x38] sm:$0xff]  ;;  %s1573_s16 = scalar_lea.vmem %s966_s15, 256  ;;  %p1578_p13 = scmp.lt.s32.totalorder %s966_s15, %s966_s15 }
  0x5f   :  { %1114 = vmatpush3.bf16.msra.mxu0 %v1113_v5  ;;  %v216_v11 = vld [vmem:[#allocation9 + $0x28] sm:$0xff]  ;;  %v215_v16 = vld [vmem:[#allocation9 + $0x20] sm:$0xff]  ;;  %v1122_v24 = vpack.c.bf16 %v121_v17, %v120_v13  ;;  %v124_v37 = vld [vmem:[#allocation8 + $0x50] sm:$0xff]  ;;  %p1574_p12 = scmp.ne.s32.totalorder %s966_s15, %s1573_s16  ;;  %p1579_p0 = scmp.lt.s32.totalorder %s1573_s16, %s1573_s16 }
  0x60   :  { %1115 = vmatprep.subr.bf16.mxu0 %v1658_v0  ;;  %v1136_v14 = vpack.c.bf16 %v216_v11, %v212_v10  ;;  %v1138_v18 = vpack.c.bf16 %v215_v16, %v211_v15  ;;  %v220_v19 = vld [vmem:[#allocation9 + $0x48] sm:$0xff]  ;;  %v219_v22 = vld [vmem:[#allocation9 + $0x40] sm:$0xff]  ;;  %v125_v41 = vld [vmem:[#allocation8 + $0x58] sm:$0xff] }
  0x61   :  { %v224_v20 = vld [vmem:[#allocation9 + $0x68] sm:$0xff]  ;;  %v223_v23 = vld [vmem:[#allocation9 + $0x60] sm:$0xff]  ;;  %v1128_v45 = vpack.c.bf16 %v125_v41, %v124_v37  ;;  %v128_v55 = vld [vmem:[#allocation8 + $0x70] sm:$0xff]  ;;  %p1580_p1 = por %p1579_p0, %p1578_p13 }
  0x62   :  { %1137 = vmatprep.subr.bf16.mxu1 %v1136_v14  ;;  %v1140_v21 = vpack.c.bf16 %v224_v20, %v220_v19  ;;  %v122_v25 = vld [vmem:[#allocation8 + $0x40] sm:$0xff]  ;;  %v1142_v26 = vpack.c.bf16 %v223_v23, %v219_v22  ;;  %v228_v27 = vld [vmem:[#allocation9 + $0x88] sm:$0xff]  ;;  %v129_v59 = vld [vmem:[#allocation8 + $0x78] sm:$0xff] }
  0x63   :  { %1117 = vmatpush3.bf16.msra.mxu0 %v1116_v7  ;;  %1139 = vmatpush1.bf16.msra.mxu1 %v1138_v18  ;;  %v232_v28 = vld [vmem:[#allocation9 + $0xa8] sm:$0xff]  ;;  %v227_v31 = vld [vmem:[#allocation9 + $0x80] sm:$0xff]  ;;  %v214_v62 = vld [vmem:[#allocation9 + $0x18] sm:$0xff]  ;;  %v1134_v3 = vpack.c.bf16 %v129_v59, %v128_v55  ;;  %p1581_p2 = pnand %p1580_p1, %p1574_p12 }
  0x64   :  { %1118 = vmatprep.subr.bf16.mxu0 %v1658_v0  ;;  %1141 = vmatprep.subr.bf16.mxu1 %v1140_v21  ;;  %v123_v29 = vld [vmem:[#allocation8 + $0x48] sm:$0xff]  ;;  %v1144_v30 = vpack.c.bf16 %v232_v28, %v228_v27  ;;  %v231_v32 = vld [vmem:[#allocation9 + $0xa0] sm:$0xff]  ;;  %v218_v63 = vld [vmem:[#allocation9 + $0x38] sm:$0xff] }
  0x65   :  { %v236_v33 = vld [vmem:[#allocation9 + $0xc8] sm:$0xff]  ;;  %v1146_v34 = vpack.c.bf16 %v231_v32, %v227_v31  ;;  %v1125_v36 = vpack.c.bf16 %v123_v29, %v122_v25  ;;  %v235_v39 = vld [vmem:[#allocation9 + $0xc0] sm:$0xff]  ;;  %v213_v4 = vld [vmem:[#allocation9 + $0x10] sm:$0xff]  ;;  %v1200_v8 = vpack.c.bf16 %v218_v63, %v214_v62 }
  0x66   :  { %v240_v35 = vld [vmem:[#allocation9 + $0xe8] sm:$0xff]  ;;  %v239_v40 = vld [vmem:[#allocation9 + $0xe0] sm:$0xff]  ;;  %v217_v9 = vld [vmem:[#allocation9 + $0x30] sm:$0xff] }
  0x67   :  { %1120 = vmatpush3.bf16.msra.mxu0 %v1119_v12  ;;  %1143 = vmatpush1.bf16.msra.mxu1 %v1142_v26  ;;  %v1148_v38 = vpack.c.bf16 %v240_v35, %v236_v33  ;;  %v244_v42 = vld [vmem:[#allocation9 + $0x108] sm:$0xff]  ;;  %v1150_v44 = vpack.c.bf16 %v239_v40, %v235_v39  ;;  %v126_v46 = vld [vmem:[#allocation8 + $0x60] sm:$0xff]  ;;  %v222_v12 = vld [vmem:[#allocation9 + $0x58] sm:$0xff]  ;;  %v1202_v16 = vpack.c.bf16 %v217_v9, %v213_v4 }
  0x68   :  { %1121 = vmatprep.subr.bf16.mxu0 %v1658_v0  ;;  %1145 = vmatprep.subr.bf16.mxu1 %v1144_v30  ;;  %v248_v43 = vld [vmem:[#allocation9 + $0x128] sm:$0xff]  ;;  %v243_v48 = vld [vmem:[#allocation9 + $0x100] sm:$0xff]  ;;  %v226_v13 = vld [vmem:[#allocation9 + $0x78] sm:$0xff] }
  0x69   :  { %v1152_v47 = vpack.c.bf16 %v248_v43, %v244_v42  ;;  %v247_v49 = vld [vmem:[#allocation9 + $0x120] sm:$0xff]  ;;  %v127_v50 = vld [vmem:[#allocation8 + $0x68] sm:$0xff]  ;;  %v221_v17 = vld [vmem:[#allocation9 + $0x50] sm:$0xff]  ;;  %v1204_v21 = vpack.c.bf16 %v226_v13, %v222_v12 }
  0x6a   :  { %v252_v51 = vld [vmem:[#allocation9 + $0x148] sm:$0xff]  ;;  %v1154_v53 = vpack.c.bf16 %v247_v49, %v243_v48  ;;  %v1131_v54 = vpack.c.bf16 %v127_v50, %v126_v46  ;;  %v251_v57 = vld [vmem:[#allocation9 + $0x140] sm:$0xff]  ;;  %v225_v22 = vld [vmem:[#allocation9 + $0x70] sm:$0xff] }
  0x6b   :  { %1123 = vmatpush3.bf16.msra.mxu0 %v1122_v24  ;;  %1147 = vmatpush1.bf16.msra.mxu1 %v1146_v34  ;;  %v256_v52 = vld [vmem:[#allocation9 + $0x168] sm:$0xff]  ;;  %v255_v58 = vld [vmem:[#allocation9 + $0x160] sm:$0xff]  ;;  %v230_v25 = vld [vmem:[#allocation9 + $0x98] sm:$0xff]  ;;  %v1206_v28 = vpack.c.bf16 %v225_v22, %v221_v17 }
  0x6c   :  { %1124 = vmatprep.subr.bf16.mxu0 %v1658_v0  ;;  %1149 = vmatprep.subr.bf16.mxu1 %v1148_v38  ;;  %v1156_v56 = vpack.c.bf16 %v256_v52, %v252_v51  ;;  %v260_v60 = vld [vmem:[#allocation9 + $0x188] sm:$0xff]  ;;  %v1158_v2 = vpack.c.bf16 %v255_v58, %v251_v57  ;;  %v259_v6 = vld [vmem:[#allocation9 + $0x180] sm:$0xff]  ;;  %v234_v26 = vld [vmem:[#allocation9 + $0xb8] sm:$0xff] }
  0x6d   :  { %v264_v61 = vld [vmem:[#allocation9 + $0x1a8] sm:$0xff]  ;;  %v263_v7 = vld [vmem:[#allocation9 + $0x1a0] sm:$0xff]  ;;  %v229_v29 = vld [vmem:[#allocation9 + $0x90] sm:$0xff]  ;;  %v1208_v33 = vpack.c.bf16 %v234_v26, %v230_v25 }
  0x6e   :  { %v1160_v5 = vpack.c.bf16 %v264_v61, %v260_v60  ;;  %v268_v10 = vld [vmem:[#allocation9 + $0x1c8] sm:$0xff]  ;;  %v113_v14 = vld [vmem:[%s1899_s0] sm:$0xff]  ;;  %v1162_v15 = vpack.c.bf16 %v263_v7, %v259_v6  ;;  %v233_v34 = vld [vmem:[#allocation9 + $0xb0] sm:$0xff] }
  0x6f   :  { %1126 = vmatpush3.bf16.msra.mxu0 %v1125_v36  ;;  %1151 = vmatpush1.bf16.msra.mxu1 %v1150_v44  ;;  %v272_v11 = vld [vmem:[#allocation9 + $0x1e8] sm:$0xff]  ;;  %v267_v19 = vld [vmem:[#allocation9 + $0x1c0] sm:$0xff]  ;;  %v238_v37 = vld [vmem:[#allocation9 + $0xd8] sm:$0xff]  ;;  %v1210_v40 = vpack.c.bf16 %v233_v34, %v229_v29 }
  0x70   :  { %1127 = vmatprep.subr.bf16.mxu0 %v1658_v0  ;;  %1153 = vmatprep.subr.bf16.mxu1 %v1152_v47  ;;  %v1164_v18 = vpack.c.bf16 %v272_v11, %v268_v10  ;;  %v271_v20 = vld [vmem:[#allocation9 + $0x1e0] sm:$0xff]  ;;  %v276_v23 = vld [vmem:[#allocation9 + $0x208] sm:$0xff]  ;;  %v242_v38 = vld [vmem:[#allocation9 + $0xf8] sm:$0xff] }
  0x71   :  { %v280_v24 = vld [vmem:[#allocation9 + $0x228] sm:$0xff]  ;;  %v1166_v27 = vpack.c.bf16 %v271_v20, %v267_v19  ;;  %v275_v31 = vld [vmem:[#allocation9 + $0x200] sm:$0xff]  ;;  %v237_v41 = vld [vmem:[#allocation9 + $0xd0] sm:$0xff] }
  0x72   :  { %v1168_v30 = vpack.c.bf16 %v280_v24, %v276_v23  ;;  %v279_v32 = vld [vmem:[#allocation9 + $0x220] sm:$0xff]  ;;  %v284_v35 = vld [vmem:[#allocation9 + $0x248] sm:$0xff]  ;;  %v241_v46 = vld [vmem:[#allocation9 + $0xf0] sm:$0xff] }
  0x73   :  { %1129 = vmatpush3.bf16.msra.mxu0 %v1128_v45  ;;  %1155 = vmatpush1.bf16.msra.mxu1 %v1154_v53  ;;  %v288_v36 = vld [vmem:[#allocation9 + $0x268] sm:$0xff]  ;;  %v1170_v39 = vpack.c.bf16 %v279_v32, %v275_v31  ;;  %v283_v43 = vld [vmem:[#allocation9 + $0x240] sm:$0xff]  ;;  %v1212_v45 = vpack.c.bf16 %v242_v38, %v238_v37  ;;  %v246_v49 = vld [vmem:[#allocation9 + $0x118] sm:$0xff]  ;;  %v1214_v52 = vpack.c.bf16 %v241_v46, %v237_v41 }
  0x74   :  { %1130 = vmatprep.subr.bf16.mxu0 %v1658_v0  ;;  %1157 = vmatprep.subr.bf16.mxu1 %v1156_v56  ;;  %v1172_v42 = vpack.c.bf16 %v288_v36, %v284_v35  ;;  %v287_v44 = vld [vmem:[#allocation9 + $0x260] sm:$0xff]  ;;  %v292_v47 = vld [vmem:[#allocation9 + $0x288] sm:$0xff]  ;;  %v250_v50 = vld [vmem:[#allocation9 + $0x138] sm:$0xff] }
  0x75   :  { %v296_v48 = vld [vmem:[#allocation9 + $0x2a8] sm:$0xff]  ;;  %v1174_v51 = vpack.c.bf16 %v287_v44, %v283_v43  ;;  %v245_v53 = vld [vmem:[#allocation9 + $0x110] sm:$0xff]  ;;  %v291_v55 = vld [vmem:[#allocation9 + $0x280] sm:$0xff]  ;;  %v1216_v57 = vpack.c.bf16 %v250_v50, %v246_v49 }
  0x76   :  { %v295_v56 = vld [vmem:[#allocation9 + $0x2a0] sm:$0xff]  ;;  %v249_v58 = vld [vmem:[#allocation9 + $0x130] sm:$0xff]  ;;  %v300_v59 = vld [vmem:[#allocation9 + $0x2c8] sm:$0xff] }
  0x77   :  { %1132 = vmatpush3.bf16.msra.mxu0 %v1131_v54  ;;  %1159 = vmatpush1.bf16.msra.mxu1 %v1158_v2  ;;  %v1176_v54 = vpack.c.bf16 %v296_v48, %v292_v47  ;;  %v304_v60 = vld [vmem:[#allocation9 + $0x2e8] sm:$0xff]  ;;  %v254_v61 = vld [vmem:[#allocation9 + $0x158] sm:$0xff]  ;;  %v1178_v63 = vpack.c.bf16 %v295_v56, %v291_v55  ;;  %v1218_v2 = vpack.c.bf16 %v249_v58, %v245_v53  ;;  %v303_v6 = vld [vmem:[#allocation9 + $0x2e0] sm:$0xff] }
  0x78   :  { %1133 = vmatprep.subr.bf16.mxu0 %v1658_v0  ;;  %1161 = vmatprep.subr.bf16.mxu1 %v1160_v5  ;;  %v258_v62 = vld [vmem:[#allocation9 + $0x178] sm:$0xff]  ;;  %v1180_v4 = vpack.c.bf16 %v304_v60, %v300_v59  ;;  %v299_v5 = vld [vmem:[#allocation9 + $0x2c0] sm:$0xff]  ;;  %v308_v9 = vld [vmem:[#allocation9 + $0x308] sm:$0xff] }
  0x79   :  { %v1220_v7 = vpack.c.bf16 %v258_v62, %v254_v61  ;;  %v312_v10 = vld [vmem:[#allocation9 + $0x328] sm:$0xff]  ;;  %v262_v11 = vld [vmem:[#allocation9 + $0x198] sm:$0xff]  ;;  %v1182_v13 = vpack.c.bf16 %v303_v6, %v299_v5  ;;  %v307_v17 = vld [vmem:[#allocation9 + $0x300] sm:$0xff] }
  0x7a   :  { %v266_v12 = vld [vmem:[#allocation9 + $0x1b8] sm:$0xff]  ;;  %v265_v20 = vld [vmem:[#allocation9 + $0x1b0] sm:$0xff]  ;;  %v320_v22 = vld [vmem:[#allocation9 + $0x368] sm:$0xff] }
  0x7b   :  { %1135 = vmatpush3.bf16.msra.mxu0 %v1134_v3  ;;  %1163 = vmatpush1.bf16.msra.mxu1 %v1162_v15  ;;  %v253_v3 = vld [vmem:[#allocation9 + $0x150] sm:$0xff]  ;;  %v1224_v19 = vpack.c.bf16 %v266_v12, %v262_v11  ;;  %v270_v23 = vld [vmem:[#allocation9 + $0x1d8] sm:$0xff]  ;;  %v315_v29 = vld [vmem:[#allocation9 + $0x340] sm:$0xff] }
  0x7c   :  { %1201 = vmatprep.subr.bf16.mxu0 %v1200_v8  ;;  %1165 = vmatprep.subr.bf16.mxu1 %v1164_v18  ;;  %v257_v8 = vld [vmem:[#allocation9 + $0x170] sm:$0xff]  ;;  %v311_v18 = vld [vmem:[#allocation9 + $0x320] sm:$0xff]  ;;  %v274_v24 = vld [vmem:[#allocation9 + $0x1f8] sm:$0xff] }
  0x7d   :  { %v261_v15 = vld [vmem:[#allocation9 + $0x190] sm:$0xff]  ;;  %v1186_v25 = vpack.c.bf16 %v311_v18, %v307_v17  ;;  %v1228_v31 = vpack.c.bf16 %v274_v24, %v270_v23  ;;  %v328_v34 = vld [vmem:[#allocation9 + $0x3a8] sm:$0xff]  ;;  %v278_v35 = vld [vmem:[#allocation9 + $0x218] sm:$0xff] }
  0x7e   :  { %1075 = vmatmul.mubr.f32.vlgmr.msra.gmra.mrb[0].mxu0 %v113_v14  ;;  %v1222_v14 = vpack.c.bf16 %v257_v8, %v253_v3  ;;  %v1226_v26 = vpack.c.bf16 %v265_v20, %v261_v15  ;;  %v273_v32 = vld [vmem:[#allocation9 + $0x1f0] sm:$0xff]  ;;  %v282_v36 = vld [vmem:[#allocation9 + $0x238] sm:$0xff]  ;;  %v323_v41 = vld [vmem:[#allocation9 + $0x380] sm:$0xff] }
  0x7f   :  { %1203 = vmatpush1.bf16.msra.mxu0 %v1202_v16  ;;  %1167 = vmatpush1.bf16.msra.mxu1 %v1166_v27  ;;  %v1184_v16 = vpack.c.bf16 %v312_v10, %v308_v9  ;;  %v269_v27 = vld [vmem:[#allocation9 + $0x1d0] sm:$0xff]  ;;  %v1232_v43 = vpack.c.bf16 %v282_v36, %v278_v35  ;;  %v336_v46 = vld [vmem:[#allocation9 + $0x3e8] sm:$0xff]  ;;  %v286_v47 = vld [vmem:[#allocation9 + $0x258] sm:$0xff] }
  0x80   :  { %1205 = vmatprep.subr.bf16.mxu0 %v1204_v21  ;;  %1169 = vmatprep.subr.bf16.mxu1 %v1168_v30  ;;  %v316_v21 = vld [vmem:[#allocation9 + $0x348] sm:$0xff]  ;;  %v319_v30 = vld [vmem:[#allocation9 + $0x360] sm:$0xff]  ;;  %v1230_v38 = vpack.c.bf16 %v273_v32, %v269_v27  ;;  %v281_v44 = vld [vmem:[#allocation9 + $0x230] sm:$0xff] }
  0x81   :  { %v1190_v37 = vpack.c.bf16 %v319_v30, %v315_v29  ;;  %v290_v48 = vld [vmem:[#allocation9 + $0x278] sm:$0xff]  ;;  %v285_v53 = vld [vmem:[#allocation9 + $0x250] sm:$0xff]  ;;  %v331_v27 = vld [vmem:[#allocation9 + $0x3c0] sm:$0xff] }
  0x82   :  { %v294_v55 = vld [vmem:[#allocation9 + $0x298] sm:$0xff]  ;;  %v293_v59 = vld [vmem:[#allocation9 + $0x290] sm:$0xff]  ;;  %v544_v35 = vld [vmem:[#allocation9 + $0x428] sm:$0xff] }
  0x83   :  { %1207 = vmatpush1.bf16.msra.mxu0 %v1206_v28  ;;  %1171 = vmatpush1.bf16.msra.mxu1 %v1170_v39  ;;  %v1188_v28 = vpack.c.bf16 %v320_v22, %v316_v21  ;;  %v277_v39 = vld [vmem:[#allocation9 + $0x210] sm:$0xff]  ;;  %v298_v56 = vld [vmem:[#allocation9 + $0x2b8] sm:$0xff] }
  0x84   :  { %1209 = vmatprep.subr.bf16.mxu0 %v1208_v33  ;;  %1173 = vmatprep.subr.bf16.mxu1 %v1172_v42  ;;  %v324_v33 = vld [vmem:[#allocation9 + $0x388] sm:$0xff]  ;;  %v327_v42 = vld [vmem:[#allocation9 + $0x3a0] sm:$0xff]  ;;  %v1234_v50 = vpack.c.bf16 %v281_v44, %v277_v39  ;;  %v1240_v58 = vpack.c.bf16 %v298_v56, %v294_v55  ;;  %v297_v60 = vld [vmem:[#allocation9 + $0x2b0] sm:$0xff] }
  0x85   :  { %v1194_v49 = vpack.c.bf16 %v327_v42, %v323_v41  ;;  %v302_v61 = vld [vmem:[#allocation9 + $0x2d8] sm:$0xff]  ;;  %v301_v3 = vld [vmem:[#allocation9 + $0x2d0] sm:$0xff]  ;;  %v539_v41 = vld [vmem:[#allocation9 + $0x400] sm:$0xff] }
  0x86   :  { %v306_v62 = vld [vmem:[#allocation9 + $0x2f8] sm:$0xff]  ;;  %v309_v9 = vld [vmem:[#allocation9 + $0x310] sm:$0xff]  ;;  %v543_v42 = vld [vmem:[#allocation9 + $0x420] sm:$0xff] }
  0x87   :  { %1211 = vmatpush1.bf16.msra.mxu0 %v1210_v40  ;;  %1175 = vmatpush1.bf16.msra.mxu1 %v1174_v51  ;;  %v1192_v40 = vpack.c.bf16 %v328_v34, %v324_v33  ;;  %v310_v5 = vld [vmem:[#allocation9 + $0x318] sm:$0xff]  ;;  %v313_v10 = vld [vmem:[#allocation9 + $0x330] sm:$0xff]  ;;  %v103_v33 = vld [vmem:[#allocation3] sm:$0xff] }
  0x88   :  { %1213 = vmatprep.subr.bf16.mxu0 %v1212_v45  ;;  %1177 = vmatprep.subr.bf16.mxu1 %v1176_v54  ;;  %v332_v45 = vld [vmem:[#allocation9 + $0x3c8] sm:$0xff]  ;;  %v289_v54 = vld [vmem:[#allocation9 + $0x270] sm:$0xff]  ;;  %v314_v6 = vld [vmem:[#allocation9 + $0x338] sm:$0xff] }
  0x89   :  { %v1196_v51 = vpack.c.bf16 %v336_v46, %v332_v45  ;;  %v1248_v8 = vpack.c.bf16 %v314_v6, %v310_v5  ;;  %v318_v11 = vld [vmem:[#allocation9 + $0x358] sm:$0xff]  ;;  %v317_v15 = vld [vmem:[#allocation9 + $0x350] sm:$0xff]  ;;  %426 = vmatprep.mubr.f32.mxu1 %v103_v33  ;;  %497 = vmatprep.mubr.f32.mxu0 %v103_v33  ;;  %v540_v34 = vld [vmem:[#allocation9 + $0x408] sm:$0xff] }
  0x8a   :  { %v322_v12 = vld [vmem:[#allocation9 + $0x378] sm:$0xff]  ;;  %v325_v21 = vld [vmem:[#allocation9 + $0x390] sm:$0xff]  ;;  %v548_v45 = vld [vmem:[#allocation9 + $0x448] sm:$0xff] }
  0x8b   :  { %1215 = vmatpush1.bf16.msra.mxu0 %v1214_v52  ;;  %1179 = vmatpush1.bf16.msra.mxu1 %v1178_v63  ;;  %v1236_v52 = vpack.c.bf16 %v290_v48, %v286_v47  ;;  %v1242_v63 = vpack.c.bf16 %v297_v60, %v293_v59  ;;  %v326_v17 = vld [vmem:[#allocation9 + $0x398] sm:$0xff]  ;;  %v329_v22 = vld [vmem:[#allocation9 + $0x3b0] sm:$0xff]  ;;  %v552_v46 = vld [vmem:[#allocation9 + $0x468] sm:$0xff] }
  0x8c   :  { %1217 = vmatprep.subr.bf16.mxu0 %v1216_v57  ;;  %1181 = vmatprep.subr.bf16.mxu1 %v1180_v4  ;;  %v1238_v57 = vpack.c.bf16 %v289_v54, %v285_v53  ;;  %v305_v4 = vld [vmem:[#allocation9 + $0x2f0] sm:$0xff]  ;;  %v330_v18 = vld [vmem:[#allocation9 + $0x3b8] sm:$0xff]  ;;  %v551_v53 = vld [vmem:[#allocation9 + $0x460] sm:$0xff]  ;;  %v1268_v56 = vpack.c.bf16 %v552_v46, %v548_v45 }
  0x8d   :  { %v1256_v20 = vpack.c.bf16 %v330_v18, %v326_v17  ;;  %v334_v23 = vld [vmem:[#allocation9 + $0x3d8] sm:$0xff]  ;;  %v333_v29 = vld [vmem:[#allocation9 + $0x3d0] sm:$0xff]  ;;  %v556_v60 = vld [vmem:[#allocation9 + $0x488] sm:$0xff] }
  0x8e   :  { %v338_v24 = vld [vmem:[#allocation9 + $0x3f8] sm:$0xff]  ;;  %v545_v44 = vld [vmem:[#allocation9 + $0x430] sm:$0xff]  ;;  %v559_v5 = vld [vmem:[#allocation9 + $0x4a0] sm:$0xff] }
  0x8f   :  { %1219 = vmatpush1.bf16.msra.mxu0 %v1218_v2  ;;  %1183 = vmatpush1.bf16.msra.mxu1 %v1182_v13  ;;  %v1244_v2 = vpack.c.bf16 %v306_v62, %v302_v61  ;;  %v1250_v13 = vpack.c.bf16 %v313_v10, %v309_v9  ;;  %v542_v36 = vld [vmem:[#allocation9 + $0x418] sm:$0xff]  ;;  %v553_v59 = vld [vmem:[#allocation9 + $0x470] sm:$0xff]  ;;  %v560_v61 = vld [vmem:[#allocation9 + $0x4a8] sm:$0xff] }
  0x90   :  { %1221 = vmatprep.subr.bf16.mxu0 %v1220_v7  ;;  %1185 = vmatprep.subr.bf16.mxu1 %v1184_v16  ;;  %v1246_v7 = vpack.c.bf16 %v305_v4, %v301_v3  ;;  %v321_v16 = vld [vmem:[#allocation9 + $0x370] sm:$0xff]  ;;  %v550_v47 = vld [vmem:[#allocation9 + $0x458] sm:$0xff]  ;;  %v555_v4 = vld [vmem:[#allocation9 + $0x480] sm:$0xff]  ;;  %v1272_v6 = vpack.c.bf16 %v560_v61, %v556_v60 }
  0x91   :  { %v554_v48 = vld [vmem:[#allocation9 + $0x478] sm:$0xff]  ;;  %v561_v9 = vld [vmem:[#allocation9 + $0x4b0] sm:$0xff]  ;;  %v564_v10 = vld [vmem:[#allocation9 + $0x4c8] sm:$0xff] }
  0x92   :  { %v558_v62 = vld [vmem:[#allocation9 + $0x498] sm:$0xff]  ;;  %v567_v17 = vld [vmem:[#allocation9 + $0x4e0] sm:$0xff]  ;;  %v581_v45 = vld [vmem:[#allocation9 + $0x550] sm:$0xff] }
  0x93   :  { %1223 = vmatpush1.bf16.msra.mxu0 %v1222_v14  ;;  %1187 = vmatpush1.bf16.msra.mxu1 %v1186_v25  ;;  %v1252_v14 = vpack.c.bf16 %v322_v12, %v318_v11  ;;  %v1258_v25 = vpack.c.bf16 %v329_v22, %v325_v21  ;;  %v568_v11 = vld [vmem:[#allocation9 + $0x4e8] sm:$0xff]  ;;  %v566_v12 = vld [vmem:[#allocation9 + $0x4d8] sm:$0xff]  ;;  %v569_v21 = vld [vmem:[#allocation9 + $0x4f0] sm:$0xff] }
  0x94   :  { %1225 = vmatprep.subr.bf16.mxu0 %v1224_v19  ;;  %1189 = vmatprep.subr.bf16.mxu1 %v1188_v28  ;;  %v1254_v19 = vpack.c.bf16 %v321_v16, %v317_v15  ;;  %v335_v28 = vld [vmem:[#allocation9 + $0x3e0] sm:$0xff]  ;;  %v1276_v18 = vpack.c.bf16 %v568_v11, %v564_v10  ;;  %v572_v22 = vld [vmem:[#allocation9 + $0x508] sm:$0xff]  ;;  %v585_v46 = vld [vmem:[#allocation9 + $0x570] sm:$0xff] }
  0x95   :  { %v1198_v30 = vpack.c.bf16 %v335_v28, %v331_v27  ;;  %v563_v16 = vld [vmem:[#allocation9 + $0x4c0] sm:$0xff]  ;;  %v596_v60 = vld [vmem:[#allocation9 + $0x5c8] sm:$0xff] }
  0x96   :  { %v600_v61 = vld [vmem:[#allocation9 + $0x5e8] sm:$0xff] }
  0x97   :  { %1227 = vmatpush1.bf16.msra.mxu0 %v1226_v26  ;;  %1191 = vmatpush1.bf16.msra.mxu1 %v1190_v37  ;;  %v1260_v26 = vpack.c.bf16 %v338_v24, %v334_v23  ;;  %v1264_v37 = vpack.c.bf16 %v544_v35, %v540_v34  ;;  %v576_v23 = vld [vmem:[#allocation9 + $0x528] sm:$0xff]  ;;  %v574_v24 = vld [vmem:[#allocation9 + $0x518] sm:$0xff]  ;;  %v577_v34 = vld [vmem:[#allocation9 + $0x530] sm:$0xff] }
  0x98   :  { %1229 = vmatprep.subr.bf16.mxu0 %v1228_v31  ;;  %1193 = vmatprep.subr.bf16.mxu1 %v1192_v40  ;;  %v337_v31 = vld [vmem:[#allocation9 + $0x3f0] sm:$0xff]  ;;  %v998_v40 = vld [vmem:[%s1905_s6] ss:$0 sm:$0xff]  ;;  %v1280_v28 = vpack.c.bf16 %v576_v23, %v572_v22  ;;  %v604_v10 = vld [vmem:[#allocation9 + $0x608] sm:$0xff] }
  0x99   :  { %v1262_v32 = vpack.c.bf16 %v337_v31, %v333_v29  ;;  %v575_v31 = vld [vmem:[#allocation9 + $0x520] sm:$0xff]  ;;  %v608_v11 = vld [vmem:[#allocation9 + $0x628] sm:$0xff] }
  0x9a   :  { %v612_v22 = vld [vmem:[#allocation9 + $0x648] sm:$0xff] }
  0x9b   :  { %1231 = vmatpush1.bf16.msra.mxu0 %v1230_v38  ;;  %1195 = vmatpush1.bf16.msra.mxu1 %v1194_v49  ;;  %v546_v38 = vld [vmem:[#allocation9 + $0x438] sm:$0xff]  ;;  %v616_v23 = vld [vmem:[#allocation9 + $0x668] sm:$0xff] }
  0x9c   :  { %1233 = vmatprep.subr.bf16.mxu0 %v1232_v43  ;;  %1197 = vmatprep.subr.bf16.mxu1 %v1196_v51  ;;  %v1328_v39 = vpack.c.bf16 %v546_v38, %v542_v36  ;;  %v541_v43 = vld [vmem:[#allocation9 + $0x410] sm:$0xff]  ;;  %v580_v36 = vld [vmem:[#allocation9 + $0x548] sm:$0xff]  ;;  %v582_v38 = vld [vmem:[#allocation9 + $0x558] sm:$0xff] }
  0x9d   :  { %v1330_v51 = vpack.c.bf16 %v545_v44, %v541_v43 }
  0x9f   :  { %1235 = vmatpush1.bf16.msra.mxu0 %v1234_v50  ;;  %1199 = vmatpush1.bf16.msra.mxu1 %v1198_v30  ;;  %v1266_v50 = vpack.c.bf16 %v543_v42, %v539_v41  ;;  %v571_v30 = vld [vmem:[#allocation9 + $0x500] sm:$0xff] }
  0xa0   :  { %1237 = vmatprep.subr.bf16.mxu0 %v1236_v52  ;;  %1265 = vmatprep.subr.bf16.mxu1 %v1264_v37  ;;  %v547_v52 = vld [vmem:[#allocation9 + $0x440] sm:$0xff]  ;;  %v1282_v33 = vpack.c.bf16 %v575_v31, %v571_v30  ;;  %v584_v37 = vld [vmem:[#allocation9 + $0x568] sm:$0xff]  ;;  %v613_v31 = vld [vmem:[#allocation9 + $0x650] sm:$0xff] }
  0xa1   :  { %v579_v41 = vld [vmem:[#allocation9 + $0x540] sm:$0xff] }
  0xa2   :  { %v583_v42 = vld [vmem:[#allocation9 + $0x560] sm:$0xff] }
  0xa3   :  { %1239 = vmatpush1.bf16.msra.mxu0 %v1238_v57  ;;  %v1332_v57 = vpack.c.bf16 %v554_v48, %v550_v47  ;;  %v1286_v44 = vpack.c.bf16 %v583_v42, %v579_v41  ;;  %v1350_v47 = vpack.c.bf16 %v585_v46, %v581_v45  ;;  %v588_v48 = vld [vmem:[#allocation9 + $0x588] sm:$0xff] }
  0xa4   :  { %1241 = vmatprep.subr.bf16.mxu0 %v1240_v58  ;;  %v549_v58 = vld [vmem:[#allocation9 + $0x450] sm:$0xff]  ;;  %v628_v46 = vld [vmem:[#allocation9 + $0x6c8] sm:$0xff] }
  0xa5   :  { %v1334_v3 = vpack.c.bf16 %v553_v59, %v549_v58  ;;  %v593_v58 = vld [vmem:[#allocation9 + $0x5b0] sm:$0xff] }
  0xa7   :  { %1243 = vmatpush1.bf16.msra.mxu0 %v1242_v63  ;;  %v562_v63 = vld [vmem:[#allocation9 + $0x4b8] sm:$0xff] }
  0xa8   :  { %1245 = vmatprep.subr.bf16.mxu0 %v1244_v2  ;;  %v1270_v2 = vpack.c.bf16 %v551_v53, %v547_v52  ;;  %v594_v52 = vld [vmem:[#allocation9 + $0x5b8] sm:$0xff]  ;;  %v587_v53 = vld [vmem:[#allocation9 + $0x580] sm:$0xff] }
  0xab   :  { %1247 = vmatpush1.bf16.msra.mxu0 %v1246_v7  ;;  %v1336_v7 = vpack.c.bf16 %v562_v63, %v558_v62  ;;  %v598_v62 = vld [vmem:[#allocation9 + $0x5d8] sm:$0xff]  ;;  %v1292_v63 = vpack.c.bf16 %v600_v61, %v596_v60 }
  0xac   :  { %1249 = vmatprep.subr.bf16.mxu0 %v1248_v8  ;;  %v557_v8 = vld [vmem:[#allocation9 + $0x490] sm:$0xff]  ;;  %v638_v61 = vld [vmem:[#allocation9 + $0x718] sm:$0xff] }
  0xad   :  { %v1338_v15 = vpack.c.bf16 %v561_v9, %v557_v8  ;;  %v601_v8 = vld [vmem:[#allocation9 + $0x5f0] sm:$0xff] }
  0xaf   :  { %1251 = vmatpush1.bf16.msra.mxu0 %v1250_v13  ;;  %v570_v13 = vld [vmem:[#allocation9 + $0x4f8] sm:$0xff] }
  0xb0   :  { %1253 = vmatprep.subr.bf16.mxu0 %v1252_v14  ;;  %v1274_v14 = vpack.c.bf16 %v559_v5, %v555_v4  ;;  %v599_v4 = vld [vmem:[#allocation9 + $0x5e0] sm:$0xff] }
  0xb3   :  { %1255 = vmatpush1.bf16.msra.mxu0 %v1254_v19  ;;  %v1340_v19 = vpack.c.bf16 %v570_v13, %v566_v12  ;;  %v606_v12 = vld [vmem:[#allocation9 + $0x618] sm:$0xff]  ;;  %v1296_v13 = vpack.c.bf16 %v608_v11, %v604_v10 }
  0xb4   :  { %1257 = vmatprep.subr.bf16.mxu0 %v1256_v20  ;;  %v565_v20 = vld [vmem:[#allocation9 + $0x4d0] sm:$0xff]  ;;  %v646_v10 = vld [vmem:[#allocation9 + $0x758] sm:$0xff] }
  0xb5   :  { %v1342_v27 = vpack.c.bf16 %v569_v21, %v565_v20  ;;  %v609_v20 = vld [vmem:[#allocation9 + $0x630] sm:$0xff] }
  0xb7   :  { %1259 = vmatpush1.bf16.msra.mxu0 %v1258_v25  ;;  %v578_v25 = vld [vmem:[#allocation9 + $0x538] sm:$0xff] }
  0xb8   :  { %1261 = vmatprep.subr.bf16.mxu0 %v1260_v26  ;;  %v1278_v26 = vpack.c.bf16 %v567_v17, %v563_v16  ;;  %v1344_v29 = vpack.c.bf16 %v578_v25, %v574_v24  ;;  %v607_v16 = vld [vmem:[#allocation9 + $0x620] sm:$0xff]  ;;  %v614_v24 = vld [vmem:[#allocation9 + $0x658] sm:$0xff]  ;;  %v1300_v25 = vpack.c.bf16 %v616_v23, %v612_v22 }
  0xb9   :  { %v654_v22 = vld [vmem:[#allocation9 + $0x798] sm:$0xff] }
  0xba   :  { %v658_v23 = vld [vmem:[#allocation9 + $0x7b8] sm:$0xff] }
  0xbb   :  { %1263 = vmatpush1.bf16.msra.mxu0 %v1262_v32  ;;  %v573_v32 = vld [vmem:[#allocation9 + $0x510] sm:$0xff] }
  0xbc   :  { %1329 = vmatprep.subr.bf16.mxu0 %v1328_v39  ;;  %v1346_v35 = vpack.c.bf16 %v577_v34, %v573_v32  ;;  %v1284_v39 = vpack.c.bf16 %v584_v37, %v580_v36  ;;  %v617_v32 = vld [vmem:[#allocation9 + $0x670] sm:$0xff]  ;;  %v620_v34 = vld [vmem:[#allocation9 + $0x688] sm:$0xff]  ;;  %v622_v36 = vld [vmem:[#allocation9 + $0x698] sm:$0xff] }
 0x151   :  { %v201_v49 = vpop.f32.mrb[0].mxu0 }
 0x152   :  { %v202_v54 = vadd.f32 %v998_v40, %v201_v49  ;;  %v1076_v55 = vpop.f32.mrb[1].mxu0  ;;  %v586_v40 = vld [vmem:[#allocation9 + $0x578] sm:$0xff]  ;;  %v592_v49 = vld [vmem:[#allocation9 + $0x5a8] sm:$0xff] }
 0x153   :  { %v1348_v43 = vpack.c.bf16 %v586_v40, %v582_v38  ;;  %v626_v38 = vld [vmem:[#allocation9 + $0x6b8] sm:$0xff]  ;;  %v623_v40 = vld [vmem:[#allocation9 + $0x6a0] sm:$0xff] }
 0x154   :  { %427 = vmatmul.mubr.f32.vlgmr.msra.gmra.mrb[0].mxu1 %v202_v54  ;;  %498 = vmatmul.mubr.f32.vlgmr.msra.gmra.mrb[2].mxu0 %v202_v54  ;;  %v591_v54 = vld [vmem:[#allocation9 + $0x5a0] sm:$0xff]  ;;  %v1368_v41 = vpack.c.bf16 %v626_v38, %v622_v36  ;;  %v666_v36 = vld [vmem:[#allocation9 + $0x7f8] sm:$0xff] }
 0x155   :  { %1267 = vmatpush1.bf16.msra.mxu1 %v1266_v50  ;;  %1331 = vmatpush1.bf16.msra.mxu0 %v1330_v51  ;;  %v590_v50 = vld [vmem:[#allocation9 + $0x598] sm:$0xff]  ;;  %v1288_v51 = vpack.c.bf16 %v592_v49, %v588_v48 }
 0x156   :  { %1269 = vmatprep.subr.bf16.mxu1 %v1268_v56  ;;  %1333 = vmatprep.subr.bf16.mxu0 %v1332_v57  ;;  %v1352_v55 = vpack.c.bf16 %v594_v52, %v590_v50  ;;  %v1290_v56 = vpack.c.bf16 %v591_v54, %v587_v53  ;;  %v589_v57 = vld [vmem:[#allocation9 + $0x590] sm:$0xff]  ;;  %v630_v48 = vld [vmem:[#allocation9 + $0x6d8] sm:$0xff]  ;;  %v631_v52 = vld [vmem:[#allocation9 + $0x6e0] sm:$0xff] }
 0x157   :  { %v1354_v59 = vpack.c.bf16 %v593_v58, %v589_v57  ;;  %v634_v50 = vld [vmem:[#allocation9 + $0x6f8] sm:$0xff]  ;;  %v636_v58 = vld [vmem:[#allocation9 + $0x708] sm:$0xff] }
 0x158   :  { %v1372_v53 = vpack.c.bf16 %v634_v50, %v630_v48  ;;  %v999_v48 = vld [vmem:[%s1905_s6 + $0x1] ss:$4 sm:$0xf] }
 0x159   :  { %1271 = vmatpush1.bf16.msra.mxu1 %v1270_v2  ;;  %1335 = vmatpush1.bf16.msra.mxu0 %v1334_v3  ;;  %v602_v2 = vld [vmem:[#allocation9 + $0x5f8] sm:$0xff]  ;;  %v595_v3 = vld [vmem:[#allocation9 + $0x5c0] sm:$0xff] }
 0x15a   :  { %1273 = vmatprep.subr.bf16.mxu1 %v1272_v6  ;;  %1337 = vmatprep.subr.bf16.mxu0 %v1336_v7  ;;  %v1356_v5 = vpack.c.bf16 %v602_v2, %v598_v62  ;;  %v1294_v6 = vpack.c.bf16 %v599_v4, %v595_v3  ;;  %v597_v7 = vld [vmem:[#allocation9 + $0x5d0] sm:$0xff]  ;;  %v642_v62 = vld [vmem:[#allocation9 + $0x738] sm:$0xff]  ;;  %v639_v3 = vld [vmem:[#allocation9 + $0x720] sm:$0xff] }
 0x15b   :  { %v1358_v9 = vpack.c.bf16 %v601_v8, %v597_v7  ;;  %v1376_v2 = vpack.c.bf16 %v642_v62, %v638_v61  ;;  %v637_v4 = vld [vmem:[#allocation9 + $0x710] sm:$0xff]  ;;  %v644_v8 = vld [vmem:[#allocation9 + $0x748] sm:$0xff] }
 0x15d   :  { %1275 = vmatpush1.bf16.msra.mxu1 %v1274_v14  ;;  %1339 = vmatpush1.bf16.msra.mxu0 %v1338_v15  ;;  %v610_v14 = vld [vmem:[#allocation9 + $0x638] sm:$0xff]  ;;  %v603_v15 = vld [vmem:[#allocation9 + $0x600] sm:$0xff] }
 0x15e   :  { %1277 = vmatprep.subr.bf16.mxu1 %v1276_v18  ;;  %1341 = vmatprep.subr.bf16.mxu0 %v1340_v19  ;;  %v1360_v17 = vpack.c.bf16 %v610_v14, %v606_v12  ;;  %v1298_v18 = vpack.c.bf16 %v607_v16, %v603_v15  ;;  %v605_v19 = vld [vmem:[#allocation9 + $0x610] sm:$0xff]  ;;  %v650_v12 = vld [vmem:[#allocation9 + $0x778] sm:$0xff]  ;;  %v647_v14 = vld [vmem:[#allocation9 + $0x760] sm:$0xff] }
 0x15f   :  { %v1362_v21 = vpack.c.bf16 %v609_v20, %v605_v19  ;;  %v1380_v15 = vpack.c.bf16 %v650_v12, %v646_v10  ;;  %v652_v19 = vld [vmem:[#allocation9 + $0x788] sm:$0xff] }
 0x161   :  { %1279 = vmatpush1.bf16.msra.mxu1 %v1278_v26  ;;  %1343 = vmatpush1.bf16.msra.mxu0 %v1342_v27  ;;  %v618_v26 = vld [vmem:[#allocation9 + $0x678] sm:$0xff]  ;;  %v611_v27 = vld [vmem:[#allocation9 + $0x640] sm:$0xff] }
 0x162   :  { %1281 = vmatprep.subr.bf16.mxu1 %v1280_v28  ;;  %1345 = vmatprep.subr.bf16.mxu0 %v1344_v29  ;;  %v615_v28 = vld [vmem:[#allocation9 + $0x660] sm:$0xff]  ;;  %v1364_v29 = vpack.c.bf16 %v618_v26, %v614_v24 }
 0x163   :  { %v1302_v30 = vpack.c.bf16 %v615_v28, %v611_v27  ;;  %v651_v26 = vld [vmem:[#allocation9 + $0x780] sm:$0xff]  ;;  %v653_v28 = vld [vmem:[#allocation9 + $0x790] sm:$0xff] }
 0x164   :  { %v655_v27 = vld [vmem:[#allocation9 + $0x7a0] sm:$0xff] }
 0x165   :  { %1283 = vmatpush1.bf16.msra.mxu1 %v1282_v33  ;;  %1347 = vmatpush1.bf16.msra.mxu0 %v1346_v35  ;;  %v1366_v33 = vpack.c.bf16 %v617_v32, %v613_v31  ;;  %v624_v35 = vld [vmem:[#allocation9 + $0x6a8] sm:$0xff] }
 0x166   :  { %1285 = vmatprep.subr.bf16.mxu1 %v1284_v39  ;;  %1349 = vmatprep.subr.bf16.mxu0 %v1348_v43  ;;  %v1304_v37 = vpack.c.bf16 %v624_v35, %v620_v34  ;;  %v619_v39 = vld [vmem:[#allocation9 + $0x680] sm:$0xff]  ;;  %v621_v43 = vld [vmem:[#allocation9 + $0x690] sm:$0xff]  ;;  %v660_v31 = vld [vmem:[#allocation9 + $0x7c8] sm:$0xff] }
 0x167   :  { %v1306_v42 = vpack.c.bf16 %v623_v40, %v619_v39  ;;  %v664_v32 = vld [vmem:[#allocation9 + $0x7e8] sm:$0xff]  ;;  %v662_v35 = vld [vmem:[#allocation9 + $0x7d8] sm:$0xff]  ;;  %v663_v39 = vld [vmem:[#allocation9 + $0x7e0] sm:$0xff] }
 0x168   :  { %v1324_v34 = vpack.c.bf16 %v664_v32, %v660_v31  ;;  %v1388_v38 = vpack.c.bf16 %v666_v36, %v662_v35  ;;  %v661_v40 = vld [vmem:[#allocation9 + $0x7d0] sm:$0xff]  ;;  %v866_v32 = vld [vmem:[#allocation11 + $0x40] sm:$0xff]  ;;  %v869_v36 = vld [vmem:[#allocation11 + $0x58] sm:$0xff] }
 0x169   :  { %1287 = vmatpush1.bf16.msra.mxu1 %v1286_v44  ;;  %1351 = vmatpush1.bf16.msra.mxu0 %v1350_v47  ;;  %v625_v44 = vld [vmem:[#allocation9 + $0x6b0] sm:$0xff]  ;;  %v632_v47 = vld [vmem:[#allocation9 + $0x6e8] sm:$0xff] }
 0x16a   :  { %1289 = vmatprep.subr.bf16.mxu1 %v1288_v51  ;;  %1353 = vmatprep.subr.bf16.mxu0 %v1352_v55  ;;  %v1370_v45 = vpack.c.bf16 %v625_v44, %v621_v43  ;;  %v1308_v49 = vpack.c.bf16 %v632_v47, %v628_v46  ;;  %v627_v51 = vld [vmem:[#allocation9 + $0x6c0] sm:$0xff]  ;;  %v629_v55 = vld [vmem:[#allocation9 + $0x6d0] sm:$0xff] }
 0x16b   :  { %v1310_v54 = vpack.c.bf16 %v631_v52, %v627_v51  ;;  %v868_v35 = vld [vmem:[#allocation11 + $0x50] sm:$0xff] }
 0x16d   :  { %1291 = vmatpush1.bf16.msra.mxu1 %v1290_v56  ;;  %1355 = vmatpush1.bf16.msra.mxu0 %v1354_v59  ;;  %v633_v56 = vld [vmem:[#allocation9 + $0x6f0] sm:$0xff]  ;;  %v640_v59 = vld [vmem:[#allocation9 + $0x728] sm:$0xff] }
 0x16e   :  { %1293 = vmatprep.subr.bf16.mxu1 %v1292_v63  ;;  %1357 = vmatprep.subr.bf16.mxu0 %v1356_v5  ;;  %v1374_v57 = vpack.c.bf16 %v633_v56, %v629_v55  ;;  %v1312_v60 = vpack.c.bf16 %v640_v59, %v636_v58  ;;  %v635_v63 = vld [vmem:[#allocation9 + $0x700] sm:$0xff]  ;;  %v641_v5 = vld [vmem:[#allocation9 + $0x730] sm:$0xff] }
 0x16f   :  { %v1378_v7 = vpack.c.bf16 %v641_v5, %v637_v4 }
 0x171   :  { %1295 = vmatpush1.bf16.msra.mxu1 %v1294_v6  ;;  %1359 = vmatpush1.bf16.msra.mxu0 %v1358_v9  ;;  %v1314_v6 = vpack.c.bf16 %v639_v3, %v635_v63  ;;  %v648_v9 = vld [vmem:[#allocation9 + $0x768] sm:$0xff] }
 0x172   :  { %1297 = vmatprep.subr.bf16.mxu1 %v1296_v13  ;;  %1361 = vmatprep.subr.bf16.mxu0 %v1360_v17  ;;  %v1316_v11 = vpack.c.bf16 %v648_v9, %v644_v8  ;;  %v643_v13 = vld [vmem:[#allocation9 + $0x740] sm:$0xff]  ;;  %v645_v17 = vld [vmem:[#allocation9 + $0x750] sm:$0xff] }
 0x173   :  { %v1318_v16 = vpack.c.bf16 %v647_v14, %v643_v13 }
 0x175   :  { %1299 = vmatpush1.bf16.msra.mxu1 %v1298_v18  ;;  %1363 = vmatpush1.bf16.msra.mxu0 %v1362_v21  ;;  %v649_v18 = vld [vmem:[#allocation9 + $0x770] sm:$0xff]  ;;  %v656_v21 = vld [vmem:[#allocation9 + $0x7a8] sm:$0xff] }
 0x176   :  { %1301 = vmatprep.subr.bf16.mxu1 %v1300_v25  ;;  %1365 = vmatprep.subr.bf16.mxu0 %v1364_v29  ;;  %v1382_v20 = vpack.c.bf16 %v649_v18, %v645_v17  ;;  %v1320_v24 = vpack.c.bf16 %v656_v21, %v652_v19  ;;  %v1384_v25 = vpack.c.bf16 %v658_v23, %v654_v22  ;;  %v858_v21 = vld [vmem:[#allocation11] sm:$0xff]  ;;  %v859_v22 = vld [vmem:[#allocation11 + $0x8] sm:$0xff] }
 0x177   :  { %v1322_v29 = vpack.c.bf16 %v655_v27, %v651_v26  ;;  %v1393_v23 = vpack.c.bf16 %v859_v22, %v858_v21  ;;  %v862_v27 = vld [vmem:[#allocation11 + $0x20] sm:$0xff] }
 0x179   :  { %1303 = vmatpush1.bf16.msra.mxu1 %v1302_v30  ;;  %1367 = vmatpush1.bf16.msra.mxu0 %v1366_v33  ;;  %v657_v30 = vld [vmem:[#allocation9 + $0x7b0] sm:$0xff] }
 0x17a   :  { %1305 = vmatprep.subr.bf16.mxu1 %v1304_v37  ;;  %1369 = vmatprep.subr.bf16.mxu0 %v1368_v41  ;;  %v1386_v33 = vpack.c.bf16 %v657_v30, %v653_v28  ;;  %v659_v37 = vld [vmem:[#allocation9 + $0x7c0] sm:$0xff]  ;;  %v665_v41 = vld [vmem:[#allocation9 + $0x7f0] sm:$0xff]  ;;  %v863_v28 = vld [vmem:[#allocation11 + $0x28] sm:$0xff] }
 0x17b   :  { %v1326_v43 = vpack.c.bf16 %v663_v39, %v659_v37  ;;  %v1390_v44 = vpack.c.bf16 %v665_v41, %v661_v40  ;;  %v864_v30 = vld [vmem:[#allocation11 + $0x30] sm:$0xff]  ;;  %v870_v37 = vld [vmem:[#allocation11 + $0x60] sm:$0xff]  ;;  %v871_v39 = vld [vmem:[#allocation11 + $0x68] sm:$0xff] }
 0x17c   :  { %v1411_v40 = vpack.c.bf16 %v871_v39, %v870_v37  ;;  %v872_v41 = vld [vmem:[#allocation11 + $0x70] sm:$0xff] }
 0x17d   :  { %1307 = vmatpush1.bf16.msra.mxu1 %v1306_v42  ;;  %1371 = vmatpush1.bf16.msra.mxu0 %v1370_v45  ;;  %v104_v42 = vld [vmem:[#allocation3 + $0x8] sm:$0xff]  ;;  %v342_v45 = vlaneseq }
 0x17e   :  { %1309 = vmatprep.subr.bf16.mxu1 %v1308_v49  ;;  %1373 = vmatprep.subr.bf16.mxu0 %v1372_v53 }
 0x17f   :  { %754 = vmatprep.mubr.f32.mxu1 %v104_v42  ;;  %825 = vmatprep.mubr.f32.mxu0 %v104_v42  ;;  %v1817_v46 = vshrl.u32 %v342_v45, 7  ;;  %v873_v42 = vld [vmem:[#allocation11 + $0x78] sm:$0xff] }
 0x181   :  { %1311 = vmatpush1.bf16.msra.mxu1 %v1310_v54  ;;  %1375 = vmatpush1.bf16.msra.mxu0 %v1374_v57  ;;  %v344_v47 = vsub.s32 0, %v1817_v46  ;;  %v348_v49 = vsub.s32 1, %v1817_v46  ;;  %v356_v54 = vsub.s32 3, %v1817_v46  ;;  %v352_v62 = vsub.s32 2, %v1817_v46 }
 0x182   :  { %1313 = vmatprep.subr.bf16.mxu1 %v1312_v60  ;;  %1377 = vmatprep.subr.bf16.mxu0 %v1376_v2 }
 0x183   :  { %v345_v50 = vrot.slane %v999_v48, %v344_v47  ;;  %v349_v51 = vrot.slane %v999_v48, %v348_v49  ;;  %v357_v61 = vrot.slane %v999_v48, %v356_v54  ;;  %v353_v2 = vrot.slane %v999_v48, %v352_v62 }
 0x185   :  { %1315 = vmatpush1.bf16.msra.mxu1 %v1314_v6  ;;  %1379 = vmatpush1.bf16.msra.mxu0 %v1378_v7 }
 0x186   :  { %1317 = vmatprep.subr.bf16.mxu1 %v1316_v11  ;;  %1381 = vmatprep.subr.bf16.mxu0 %v1380_v15  ;;  %v107_v11 = vld [vmem:[#allocation6] sm:$0xff] }
 0x189   :  { %1319 = vmatpush1.bf16.msra.mxu1 %v1318_v16  ;;  %1383 = vmatpush1.bf16.msra.mxu0 %v1382_v20 }
 0x18a   :  { %1321 = vmatprep.subr.bf16.mxu1 %v1320_v24  ;;  %1385 = vmatprep.subr.bf16.mxu0 %v1384_v25  ;;  %v860_v24 = vld [vmem:[#allocation11 + $0x10] sm:$0xff]  ;;  %v861_v25 = vld [vmem:[#allocation11 + $0x18] sm:$0xff] }
 0x18b   :  { %v1396_v26 = vpack.c.bf16 %v861_v25, %v860_v24 }
 0x18d   :  { %1323 = vmatpush1.bf16.msra.mxu1 %v1322_v29  ;;  %1387 = vmatpush1.bf16.msra.mxu0 %v1386_v33  ;;  %v1399_v29 = vpack.c.bf16 %v863_v28, %v862_v27  ;;  %v867_v33 = vld [vmem:[#allocation11 + $0x48] sm:$0xff] }
 0x18e   :  { %1325 = vmatprep.subr.bf16.mxu1 %v1324_v34  ;;  %1389 = vmatprep.subr.bf16.mxu0 %v1388_v38  ;;  %v1405_v34 = vpack.c.bf16 %v867_v33, %v866_v32  ;;  %v1408_v38 = vpack.c.bf16 %v869_v36, %v868_v35 }
 0x191   :  { %1327 = vmatpush1.bf16.msra.mxu1 %v1326_v43  ;;  %1391 = vmatpush1.bf16.msra.mxu0 %v1390_v44  ;;  %v1414_v43 = vpack.c.bf16 %v873_v42, %v872_v41  ;;  %v1003_v44 = vld [vmem:[%s1905_s6 + $0x2] ss:$4 sm:$0xf] }
 0x192   :  { %1392 = vmatprep.subr.bf16.mxu1 %v1658_v0  ;;  %v673_v45 = vrot.slane %v1003_v44, %v344_v47  ;;  %v677_v48 = vrot.slane %v1003_v44, %v348_v49  ;;  %v681_v47 = vrot.slane %v1003_v44, %v352_v62 }
 0x227   :  { %v428_v52 = vpop.f32.mrb[0].mxu1  ;;  %v499_v53 = vpop.f32.mrb[2].mxu0 }
 0x228   :  { %v429_v55 = vadd.f32 %v428_v52, %v345_v50  ;;  %v430_v56 = vpop.f32.mrb[1].mxu1  ;;  %v501_v57 = vpop.f32.mrb[3].mxu0  ;;  %v500_v4 = vadd.f32 %v499_v53, %v353_v2 }
 0x229   :  { %v431_v58 = vadd.f32 %v430_v56, %v349_v51  ;;  %v502_v63 = vadd.f32 %v501_v57, %v357_v61 }
 0x22a   :  { %v1000_v59 = vmul.f32 -1.442695, %v429_v55 }
 0x22b   :  { %v1001_v60 = vmul.f32 -1.442695, %v431_v58  ;;  %v1002_v3 = vmul.f32 -1.442695, %v502_v63 }
 0x22c   :  { %1431 = vpow2.f32 %v1000_v59 }
 0x22d   :  { %1433 = vpow2.f32 %v1001_v60 }
 0x22e   :  { %1435 = vpow2.f32 %v1002_v3 }
 0x22f   :  { %1437 = vtanh.f32 %v500_v4 }
 0x236   :  { %v1432_v5 = vpop.eup %1431 }
 0x237   :  { %v1434_v6 = vpop.eup %1433  ;;  %v507_v7 = vadd.f32 1.0, %v1432_v5 }
 0x238   :  { %v513_v8 = vadd.f32 1.0, %v1434_v6  ;;  %v1436_v9 = vpop.eup %1435  ;;  %v108_v6 = vld [vmem:[#allocation6 + $0x8] sm:$0xff] }
 0x239   :  { %1439 = vrcp.f32 %v507_v7  ;;  %v1438_v10 = vpop.eup %1437  ;;  %v520_v15 = vadd.f32 1.0, %v1436_v9 }
 0x23a   :  { %1441 = vrcp.f32 %v513_v8 }
 0x23b   :  { %1443 = vrcp.f32 %v520_v15 }
 0x243   :  { %v1440_v12 = vpop.eup %1439 }
 0x244   :  { %v1442_v13 = vpop.eup %1441  ;;  %v524_v14 = vmul.f32 %v1440_v12, %v1438_v10 }
 0x245   :  { %v523_v16 = vmul.f32 %v1442_v13, %v107_v11  ;;  %v1444_v18 = vpop.eup %1443 }
 0x247   :  { %v525_v17 = vadd.f32 %v524_v14, %v523_v16 }
 0x249   :  { %529 = vst [vmem:[#allocation15] sm:$0xff] %v525_v17  ;;  %1445 = vtanh.f32 %v525_v17 }
 0x253   :  { %v1446_v19 = vpop.eup %1445 }
 0x254   :  { %v527_v20 = vmul.f32 %v1446_v19, %v1444_v18 }
 0x256   :  { %755 = vmatmul.mubr.f32.vlgmr.msra.gmra.mrb[2].mxu1 %v527_v20  ;;  %528 = vst [vmem:[#allocation13] sm:$0xff] %v527_v20  ;;  %826 = vmatmul.mubr.f32.vlgmr.msra.gmra.mrb[4].mxu0 %v527_v20 }
 0x257   :  { %1109 = vmatprep.mubr.msk.f32.mxu1 %vm1659_vm0, %v1660_v1  ;;  %1394 = vmatpush3.bf16.msra.mxu1 %v1393_v23  ;;  %v865_v1 = vld [vmem:[#allocation11 + $0x38] sm:$0xff] }
 0x258   :  { %1395 = vmatprep.subr.bf16.mxu1 %v1658_v0  ;;  %v1402_v31 = vpack.c.bf16 %v865_v1, %v864_v30 }
 0x25b   :  { %1397 = vmatpush3.bf16.msra.mxu1 %v1396_v26 }
 0x25c   :  { %1398 = vmatprep.subr.bf16.mxu1 %v1658_v0 }
 0x25f   :  { %1400 = vmatpush3.bf16.msra.mxu1 %v1399_v29 }
 0x260   :  { %1401 = vmatprep.subr.bf16.mxu1 %v1658_v0 }
 0x263   :  { %1403 = vmatpush3.bf16.msra.mxu1 %v1402_v31 }
 0x264   :  { %1404 = vmatprep.subr.bf16.mxu1 %v1658_v0 }
 0x267   :  { %1406 = vmatpush3.bf16.msra.mxu1 %v1405_v34 }
 0x268   :  { %1407 = vmatprep.subr.bf16.mxu1 %v1658_v0 }
 0x26b   :  { %1409 = vmatpush3.bf16.msra.mxu1 %v1408_v38 }
 0x26c   :  { %1410 = vmatprep.subr.bf16.mxu1 %v1658_v0 }
 0x26f   :  { %1412 = vmatpush3.bf16.msra.mxu1 %v1411_v40 }
 0x270   :  { %1413 = vmatprep.subr.bf16.mxu1 %v1658_v0  ;;  %v685_v0 = vrot.slane %v1003_v44, %v356_v54 }
 0x273   :  { %1415 = vmatpush3.bf16.msra.mxu1 %v1414_v43 }
 0x329   :  { %v756_v50 = vpop.f32.mrb[2].mxu1  ;;  %v827_v51 = vpop.f32.mrb[4].mxu0 }
 0x32a   :  { %v757_v52 = vadd.f32 %v756_v50, %v673_v45  ;;  %v758_v53 = vpop.f32.mrb[3].mxu1  ;;  %v829_v55 = vpop.f32.mrb[5].mxu0  ;;  %v828_v61 = vadd.f32 %v827_v51, %v681_v47 }
 0x32b   :  { %v759_v56 = vadd.f32 %v758_v53, %v677_v48  ;;  %v830_v59 = vadd.f32 %v829_v55, %v685_v0 }
 0x32c   :  { %v1004_v57 = vmul.f32 -1.442695, %v757_v52 }
 0x32d   :  { %v1005_v58 = vmul.f32 -1.442695, %v759_v56  ;;  %v1006_v60 = vmul.f32 -1.442695, %v830_v59 }
 0x32e   :  { %1447 = vpow2.f32 %v1004_v57 }
 0x32f   :  { %1449 = vpow2.f32 %v1005_v58 }
 0x330   :  { %1451 = vpow2.f32 %v1006_v60 }
 0x331   :  { %1453 = vtanh.f32 %v828_v61 }
 0x338   :  { %v1448_v49 = vpop.eup %1447 }
 0x339   :  { %v1450_v63 = vpop.eup %1449  ;;  %v835_v2 = vadd.f32 1.0, %v1448_v49 }
 0x33a   :  { %v841_v3 = vadd.f32 1.0, %v1450_v63  ;;  %v1452_v4 = vpop.eup %1451 }
 0x33b   :  { %1455 = vrcp.f32 %v835_v2  ;;  %v1454_v5 = vpop.eup %1453  ;;  %v848_v9 = vadd.f32 1.0, %v1452_v4 }
 0x33c   :  { %1457 = vrcp.f32 %v841_v3 }
 0x33d   :  { %1459 = vrcp.f32 %v848_v9 }
 0x345   :  { %v1456_v54 = vpop.eup %1455 }
 0x346   :  { %v1458_v7 = vpop.eup %1457  ;;  %v852_v8 = vmul.f32 %v1456_v54, %v1454_v5 }
 0x347   :  { %v851_v10 = vmul.f32 %v1458_v7, %v108_v6  ;;  %v1460_v62 = vpop.eup %1459 }
 0x349   :  { %v853_v46 = vadd.f32 %v852_v8, %v851_v10 }
 0x34b   :  { %857 = vst [vmem:[#allocation15 + $0x8] sm:$0xff] %v853_v46  ;;  %1461 = vtanh.f32 %v853_v46 }
 0x355   :  { %v1462_v11 = vpop.eup %1461 }
 0x356   :  { %v855_v12 = vmul.f32 %v1462_v11, %v1460_v62 }
 0x358   :  { %1110 = vmatmul.mubr.f32.vlgmr.msra.gmra.mrb[4].mxu1 %v855_v12  ;;  %856 = vst [vmem:[#allocation13 + $0x8] sm:$0xff] %v855_v12 }
 0x359   :  { %1584 = shalt.err (!%p1581_p2)
}
 0x35a   :  { %s1585_s18 = scalar_lea.hbm %s1907_s8, 256 }
 0x35b   :  { %p1586_p3 = scmp.ne.s32.totalorder %s1907_s8, %s1585_s18  ;;  %p1589_p4 = scmp.lt.u32.totalorder %s1585_s18, %s1907_s8 }
 0x35d   :  { %p1591_p5 = pnand %p1589_p4, %p1586_p3 }
 0x35f   :  { %1594 = shalt.err (!%p1591_p5)
}
 0x360   :  { %971 = dma.vmem_to_hbm [thread:$0]  %s966_s15, 256, %s1907_s8, [#allocation14], %s1651_s21, %s1651_s21, %s1652_s22  }
 0x361   :  { %s1662_s28 = smov [#allocation15]  }
 0x362   :  { %s977_s4 = sshll.u32 %s1662_s28, 4  ;;  %s978_s4 = int_to_ptr.vmem [resolvable:$true] %s977_s4 }
 0x363   :  { %s1595_s12 = scalar_lea.vmem %s978_s4, 256  ;;  %p1600_p7 = scmp.lt.s32.totalorder %s978_s4, %s978_s4 }
 0x364   :  { %p1596_p6 = scmp.ne.s32.totalorder %s978_s4, %s1595_s12  ;;  %p1601_p8 = scmp.lt.s32.totalorder %s1595_s12, %s1595_s12 }
 0x366   :  { %p1602_p9 = por %p1601_p8, %p1600_p7 }
 0x368   :  { %p1603_p10 = pnand %p1602_p9, %p1596_p6 }
 0x36a   :  { %1606 = shalt.err (!%p1603_p10)
}
 0x36b   :  { %s1607_s5 = scalar_lea.hbm %s1908_s9, 256 }
 0x36c   :  { %p1608_p11 = scmp.ne.s32.totalorder %s1908_s9, %s1607_s5  ;;  %p1611_p12 = scmp.lt.u32.totalorder %s1607_s5, %s1908_s9 }
 0x36e   :  { %p1613_p13 = pnand %p1611_p12, %p1608_p11 }
 0x370   :  { %1616 = shalt.err (!%p1613_p13)
}
 0x371   :  { %983 = dma.vmem_to_hbm [thread:$0]  %s978_s4, 256, %s1908_s9, [#allocation14], %s1651_s21, %s1651_s21, %s1652_s22  }
 0x372   :  { %v1007_v13 = vld [vmem:[%s1905_s6 + $0x3] ss:$0 sm:$0xff]  ;;  %s1663_s14 = smov [#allocation12]  }
 0x373   :  { %s956_s15 = sshll.u32 %s1663_s14, 4  ;;  %s957_s15 = int_to_ptr.vmem [resolvable:$true] %s956_s15 }
 0x374   :  { %s1617_s16 = scalar_lea.vmem %s957_s15, 128  ;;  %p1622_p1 = scmp.lt.s32.totalorder %s957_s15, %s957_s15 }
 0x375   :  { %p1618_p0 = scmp.ne.s32.totalorder %s957_s15, %s1617_s16  ;;  %p1623_p2 = scmp.lt.s32.totalorder %s1617_s16, %s1617_s16 }
 0x377   :  { %p1624_p3 = por %p1623_p2, %p1622_p1 }
 0x379   :  { %p1625_p4 = pnand %p1624_p3, %p1618_p0 }
 0x42b   :  { %v945_v14 = vpop.f32.mrb[4].mxu1 }
 0x42c   :  { %v946_v15 = vadd.f32 %v1007_v13, %v945_v14  ;;  %v1111_v16 = vpop.f32.mrb[5].mxu1 }
 0x42e   :  { %949 = vst [vmem:[#allocation12] sm:$0xff] %v946_v15 }
 0x42f   :  { %1628 = shalt.err (!%p1625_p4)
}
 0x430   :  { %s1629_s21 = scalar_lea.hbm %s1906_s7, 128 }
 0x431   :  { %p1630_p5 = scmp.ne.s32.totalorder %s1906_s7, %s1629_s21  ;;  %p1633_p6 = scmp.lt.u32.totalorder %s1629_s21, %s1906_s7 }
 0x433   :  { %p1635_p7 = pnand %p1633_p6, %p1630_p5 }
 0x435   :  { %1638 = shalt.err (!%p1635_p7)
}
 0x436   :  { %959 = dma.vmem_to_hbm [thread:$0]  %s957_s15, 128, %s1906_s7, [#allocation5]  }
 0x437   :  { %1645 = dma.done.wait [#allocation5], 128  }
 0x438   :  { %1646 = vsyncadd [#allocation5], 4294967168 }
 0x439   :  { %1647 = dma.done.wait [#allocation14], 512  }
 0x43a   :  { %1648 = vsyncadd [#allocation14], 4294966784 }
 0x43b   :  { %993 = vsyncpa [#allocation4], 1 }
 0x43c   :  { %994 = vsyncpa [#allocation7], 1 }
 0x43d   :  { %995 = vsyncpa [#allocation10], 1 }
 0x43e   :  { %996 = vsyncpa [#allocation5], 1 }
 0x43f   :  { %997 = vsyncpa [#allocation14], 1 }

</bundles_post_ra>
